<compile_context>
chip_gen: v5e
topology: v5e:2x2
jax: 0.10.0
libtpu: 0.0.40
codegen_flags: <defaults>
</compile_context>

<pallas_src>
import numpy as np
import jax
import jax.numpy as jnp
from jax.experimental import pallas as pl
from jax.experimental.pallas import tpu as pltpu

# ----------------------------- model dims -----------------------------------
B = 2            # batch
CIN = 3          # image channels
H = W = 16       # spatial
HW = H * W
FEAT = 32        # backbone / hand feature channels
J = 21           # single-hand joints (mano.sh_joint_num)
MANO_J = 16      # mano.orig_joint_num
N6 = 2 * MANO_J  # 6D rotations per sample (right 16 + left 16) = 32
POSE3 = (MANO_J - 1) * 3       # 45
SHAPE = 10
CAM = 3
V = 64           # synthetic MANO vertex count (real MANO: 778)
ROOT_IDX = 0     # mano.sh_root_joint_idx

POS_OUT = 2 * J * 3 + 2 * FEAT               # 190 (rjoint, ljoint, rfeat, lfeat)
ROT_OUT = 6 * N6 + 2 * (SHAPE + CAM) + 3     # 221 (6D planar, shapes, cams, rel_trans)

# ----------------------------- head column layout -----------------------------
HC_C6D = 0                                   # 6 x 32 rot6d component planes
HC_RCAM = 6 * N6                             # 192
HC_LCAM = HC_RCAM + CAM                      # 195
HC_OUT = 256                                 # store block start (128-aligned)
HC_JIMG = HC_OUT                             # 126 joint_img cols (interleaved xyz)
HC_SHAPES = HC_OUT + 2 * J * 3               # 382: rshape(10) | lshape(10)
HC_REL = HC_SHAPES + 2 * SHAPE               # 402: rel_trans(3)
HEAD_STORE_W = 2 * J * 3 + 2 * SHAPE + 3     # 149
NH = 408

# ----------------------------- MANO proxy layout ------------------------------
MANO_IN = 3 * N6 + 2 * SHAPE                 # 116: aa_x(32)|aa_y(32)|aa_z(32)|rshape|lshape
MC_RMESH = 0                                 # 192: right centered mesh (interleaved xyz)
MC_RJC = MC_RMESH + V * 3                    # 192: right centered joints (63)
MC_RROOT = MC_RJC + J * 3                    # 255: right root_cam (3)
MC_LMESH = MC_RROOT + 3                      # 258
MC_LJC = MC_LMESH + V * 3                    # 450
MC_LROOT = MC_LJC + J * 3                    # 513
MC_POSE = MC_LROOT + 3                       # 516: mano_pose interleaved (96)
MC_RPROJ = MC_POSE + 3 * N6                  # 612: right uncentered joint xy (42)
MC_LPROJ = MC_RPROJ + 2 * J                  # 654: left  uncentered joint xy (42)
NM = MC_LPROJ + 2 * J                        # 696

# ----------------------------- output slab layout -----------------------------
OC_HEAD = 0                                  # 149: jimg | rshape | lshape | rel_trans
OC_MANO = 256                                # 612: mesh/joints/roots/pose (128-aligned)
OC_PROJ = 896                                # 84 : rproj(42) | lproj(42) (128-aligned)
OUT_COLS = 1024


# --------------------------- fused kernel body --------------------------------
def _fused_kernel(img_ref, bb_ref, head_ref, mano_ref, out_ref):
    f32 = jnp.float32

    out_ref[...] = jnp.zeros((B, OUT_COLS), f32)          # deterministic padding

    # ---- hand_backbone: 1x1 conv (channel matmul) + ReLU, B*HW on lanes ----
    img = img_ref[...]                                    # [CIN, B*HW]
    bbw = bb_ref[:, 0:CIN]                                # [FEAT, CIN]
    bbb = bb_ref[:, CIN:CIN + 1]                          # [FEAT, 1]
    feat = jnp.maximum(jnp.dot(bbw, img, preferred_element_type=f32) + bbb, 0.0)

    # ---- hand_position_net pooling: global avg pool per batch (lane reduce) ----
    pooled = jnp.concatenate(
        [jnp.mean(feat[:, b * HW:(b + 1) * HW], axis=1, keepdims=True)
         for b in range(B)], axis=1)                      # [FEAT, B]

    # ---- fused position + rotation heads (pos->rot folded offline) ----
    hwt = head_ref[0:FEAT, :]                             # [FEAT, NH]
    hbt = head_ref[FEAT:FEAT + 1, :]                      # [1, NH]
    ro = jax.lax.dot_general(pooled, hwt, (((0,), (0,)), ((), ())),
                             preferred_element_type=f32) + hbt      # [B, NH]

    # joint_img | rshape | lshape | rel_trans -> straight to the output slab
    out_ref[:, OC_HEAD:OC_HEAD + HEAD_STORE_W] = ro[:, HC_OUT:HC_OUT + HEAD_STORE_W]

    c0 = ro[:, 0 * N6:1 * N6]
    c1 = ro[:, 1 * N6:2 * N6]
    c2 = ro[:, 2 * N6:3 * N6]
    c3 = ro[:, 3 * N6:4 * N6]
    c4 = ro[:, 4 * N6:5 * N6]
    c5 = ro[:, 5 * N6:6 * N6]
    rcam = ro[:, HC_RCAM:HC_RCAM + CAM]                   # [B, 3]
    lcam = ro[:, HC_LCAM:HC_LCAM + CAM]                   # [B, 3]
    shapes = ro[:, HC_SHAPES:HC_SHAPES + 2 * SHAPE]       # [B, 20] rshape | lshape

    # ---- rot6d -> axis-angle (component-planar Gram-Schmidt, VPU/EUP only) ----
    eps = 1e-8
    n1 = jax.lax.rsqrt(c0 * c0 + c1 * c1 + c2 * c2 + eps)
    b1x, b1y, b1z = c0 * n1, c1 * n1, c2 * n1
    d = b1x * c3 + b1y * c4 + b1z * c5
    ux, uy, uz = c3 - d * b1x, c4 - d * b1y, c5 - d * b1z
    n2 = jax.lax.rsqrt(ux * ux + uy * uy + uz * uz + eps)
    b2x, b2y, b2z = ux * n2, uy * n2, uz * n2
    b3x = b1y * b2z - b1z * b2y
    b3y = b1z * b2x - b1x * b2z
    b3z = b1x * b2y - b1y * b2x
    tr = b1x + b2y + b3z
    wx = b2z - b3y
    wy = b3x - b1z
    wz = b1y - b2x
    cos_t = jnp.clip((tr - 1.0) * 0.5, -1.0, 1.0)
    # TODO(synk): arccos approximated in-kernel (Abramowitz-Stegun 4.4.45 minimax
    # poly, |err| < 7e-5 rad) since exact inverse-trig lowering is not guaranteed.
    acx = jnp.abs(cos_t)
    poly = 1.5707288 + acx * (-0.2121144 + acx * (0.0742610 + acx * (-0.0187293)))
    acos_pos = jnp.sqrt(jnp.maximum(1.0 - acx, 0.0)) * poly
    theta = jnp.where(cos_t >= 0.0, acos_pos, jnp.pi - acos_pos)
    sin_t = jnp.sqrt(jnp.maximum(1.0 - cos_t * cos_t, 0.0))        # sin(acos(c))
    scale = theta * pl.reciprocal(2.0 * sin_t + 1e-8, approx=True)  # EUP divide
    aa_x, aa_y, aa_z = wx * scale, wy * scale, wz * scale           # [B, 32] each

    # ---- MANO proxy: joint regression, root-centering, root extraction, pose
    #      passthrough and projection inputs are all folded offline into mano_w ----
    # TODO(synk): full MANO LBS (Rodrigues + blend skinning) replaced by a linear
    # vertex proxy with the template folded into the bias row.
    inp = jnp.concatenate([aa_x, aa_y, aa_z, shapes], axis=1)       # [B, 116]
    mw = mano_ref[0:MANO_IN, :]                                     # [116, NM]
    mb = mano_ref[MANO_IN:MANO_IN + 1, :]                           # [1, NM]
    verts = jnp.dot(inp, mw, preferred_element_type=f32) + mb       # [B, NM]

    # mesh / joints / roots / mano_pose already in final interleaved layout
    out_ref[:, OC_MANO:OC_MANO + MC_RPROJ] = verts[:, 0:MC_RPROJ]

    # ---- weak-perspective projection on the uncentered joint-xy block ----
    projin = verts[:, MC_RPROJ:MC_RPROJ + 4 * J]                    # [B, 84]
    lane = jax.lax.broadcasted_iota(jnp.int32, (B, 4 * J), 1)
    is_r = lane < 2 * J
    is_x = (lane & 1) == 0
    focal = jnp.where(is_r, rcam[:, 0:1], lcam[:, 0:1])
    tx = jnp.where(is_r, rcam[:, 1:2], lcam[:, 1:2])
    ty = jnp.where(is_r, rcam[:, 2:3], lcam[:, 2:3])
    out_ref[:, OC_PROJ:OC_PROJ + 4 * J] = projin * focal + jnp.where(is_x, tx, ty)


# ------------------------------ pallas wrapper --------------------------------
def _vmem_spec():
    return pl.BlockSpec(memory_space=pltpu.MemorySpace.VMEM)


def _fused_forward_call(img2, params):
    return pl.pallas_call(
        _fused_kernel,
        out_shape=jax.ShapeDtypeStruct((B, OUT_COLS), jnp.float32),
        in_specs=[_vmem_spec(), _vmem_spec(), _vmem_spec(), _vmem_spec()],
        out_specs=_vmem_spec(),
    )(img2, params['bb'], params['head'], params['mano'])


# ------------------------------ parameters -----------------------------------
def init_params(seed=42):
    key = jax.random.PRNGKey(seed)
    ks = jax.random.split(key, 8)

    def nrm(k, shape, scale=0.05):
        return np.asarray(scale * jax.random.normal(k, shape, dtype=jnp.float32))

    # synthetic stand-in sub-network weights (deterministic)
    bb_w = nrm(ks[0], (FEAT, CIN))
    bb_b = np.zeros((FEAT, 1), np.float32)
    pos_w = nrm(ks[1], (FEAT, POS_OUT))
    pos_b = np.zeros((POS_OUT,), np.float32)
    rot_w = nrm(ks[2], (POS_OUT, ROT_OUT))
    rot_b = np.zeros((ROT_OUT,), np.float32)
    mano_w_r = nrm(ks[3], (58, V, 3))
    mano_w_l = nrm(ks[4], (58, V, 3))
    tmpl_r = nrm(ks[5], (V, 3), 0.1)
    tmpl_l = nrm(ks[6], (V, 3), 0.1)
    reg = np.asarray(jax.nn.softmax(jax.random.normal(ks[7], (J, V), jnp.float32), axis=1))

    # --- backbone slab [FEAT, CIN+1] : [conv weight | bias] ---
    bb_slab = np.concatenate([bb_w, bb_b], axis=1)

    # --- fold position head @ rotation head (stop_gradient == identity forward) ---
    rot_full_w = pos_w @ rot_w                       # [FEAT, 221]
    rot_full_b = pos_b @ rot_w + rot_b               # [221]

    head_w = np.zeros((FEAT, NH), np.float32)
    head_b = np.zeros((NH,), np.float32)
    # 6D component planes (6 x 32)
    head_w[:, HC_C6D:HC_C6D + 6 * N6] = rot_full_w[:, 0:6 * N6]
    head_b[HC_C6D:HC_C6D + 6 * N6] = rot_full_b[0:6 * N6]
    off = 6 * N6
    # reference rot-head column order: rshape, rcam, lshape, lcam, rel_trans
    head_w[:, HC_SHAPES:HC_SHAPES + SHAPE] = rot_full_w[:, off:off + SHAPE]
    head_b[HC_SHAPES:HC_SHAPES + SHAPE] = rot_full_b[off:off + SHAPE]
    head_w[:, HC_RCAM:HC_RCAM + CAM] = rot_full_w[:, off + SHAPE:off + SHAPE + CAM]
    head_b[HC_RCAM:HC_RCAM + CAM] = rot_full_b[off + SHAPE:off + SHAPE + CAM]
    head_w[:, HC_SHAPES + SHAPE:HC_SHAPES + 2 * SHAPE] = \
        rot_full_w[:, off + SHAPE + CAM:off + 2 * SHAPE + CAM]
    head_b[HC_SHAPES + SHAPE:HC_SHAPES + 2 * SHAPE] = \
        rot_full_b[off + SHAPE + CAM:off + 2 * SHAPE + CAM]
    head_w[:, HC_LCAM:HC_LCAM + CAM] = \
        rot_full_w[:, off + 2 * SHAPE + CAM:off + 2 * SHAPE + 2 * CAM]
    head_b[HC_LCAM:HC_LCAM + CAM] = \
        rot_full_b[off + 2 * SHAPE + CAM:off + 2 * SHAPE + 2 * CAM]
    head_w[:, HC_REL:HC_REL + 3] = rot_full_w[:, off + 2 * SHAPE + 2 * CAM:]
    head_b[HC_REL:HC_REL + 3] = rot_full_b[off + 2 * SHAPE + 2 * CAM:]
    # joint_img columns straight from the position head (interleaved xyz)
    head_w[:, HC_JIMG:HC_JIMG + 2 * J * 3] = pos_w[:, 0:2 * J * 3]
    head_b[HC_JIMG:HC_JIMG + 2 * J * 3] = pos_b[0:2 * J * 3]

    head_slab = np.concatenate([head_w, head_b[None, :]], axis=0)   # [33, NH]

    # --- MANO proxy weight with joint regression, root-centering, root extraction,
    #     interleaved-pose passthrough and projection inputs folded in ---
    mano_w = np.zeros((MANO_IN, NM), np.float32)
    mano_b = np.zeros((NM,), np.float32)

    def hand_rows(h):
        idx = []
        for dd in range(3):
            idx += list(range(N6 * dd + MANO_J * h, N6 * dd + MANO_J * h + MANO_J))
        idx += list(range(3 * N6 + SHAPE * h, 3 * N6 + SHAPE * h + SHAPE))
        return np.asarray(idx, np.int64)                 # (58,)

    hands = [(0, mano_w_r, tmpl_r, MC_RMESH, MC_RJC, MC_RROOT, MC_RPROJ),
             (1, mano_w_l, tmpl_l, MC_LMESH, MC_LJC, MC_LROOT, MC_LPROJ)]
    for h, Wm, tmpl, c_mesh, c_jc, c_root, c_proj in hands:
        rows = hand_rows(h)
        Wj = np.einsum('kvd,jv->kjd', Wm, reg)           # [58, J, 3]
        bj = reg @ tmpl                                  # [J, 3]
        Wr = Wj[:, ROOT_IDX, :]                          # [58, 3]
        br = bj[ROOT_IDX, :]                             # [3]
        Wm_c = Wm - Wr[:, None, :]                       # root-centered mesh
        bm_c = tmpl - br[None, :]
        Wj_c = Wj - Wr[:, None, :]                       # root-centered joints
        bj_c = bj - br[None, :]
        mano_w[rows, c_mesh:c_mesh + V * 3] = Wm_c.reshape(58, V * 3)
        mano_b[c_mesh:c_mesh + V * 3] = bm_c.reshape(V * 3)
        mano_w[rows, c_jc:c_jc + J * 3] = Wj_c.reshape(58, J * 3)
        mano_b[c_jc:c_jc + J * 3] = bj_c.reshape(J * 3)
        mano_w[rows, c_root:c_root + 3] = Wr
        mano_b[c_root:c_root + 3] = br
        mano_w[rows, c_proj:c_proj + 2 * J] = Wj[:, :, 0:2].reshape(58, 2 * J)
        mano_b[c_proj:c_proj + 2 * J] = bj[:, 0:2].reshape(2 * J)

    # interleaved mano_pose passthrough (permutation block)
    for m in range(N6):
        for dd in range(3):
            mano_w[N6 * dd + m, MC_POSE + 3 * m + dd] = 1.0

    mano_slab = np.concatenate([mano_w, mano_b[None, :]], axis=0)   # [117, NM]

    return {'bb': jnp.asarray(bb_slab),
            'head': jnp.asarray(head_slab),
            'mano': jnp.asarray(mano_slab)}


# ------------------------------- forward --------------------------------------
def forward(img, params):
    """Equivalent of Model.forward(inputs, mode='test') on synthetic subnets."""
    b, c, h, w = img.shape
    assert (b, c, h, w) == (B, CIN, H, W)
    img2 = jnp.transpose(img, (1, 0, 2, 3)).reshape(CIN, B * HW)   # wrapper-side layout

    slab = _fused_forward_call(img2, params)                       # [B, 1024]

    # ---------- slice the single lane-dense slab (outputs already interleaved) ----------
    joint_img = slab[:, 0:2 * J * 3].reshape(B, 2 * J, 3)
    rjoint_img = joint_img[:, :J, :]
    rshape = slab[:, 2 * J * 3:2 * J * 3 + SHAPE]
    lshape = slab[:, 2 * J * 3 + SHAPE:2 * J * 3 + 2 * SHAPE]
    mano_shape = slab[:, 2 * J * 3:2 * J * 3 + 2 * SHAPE]
    rel_trans = slab[:, 2 * J * 3 + 2 * SHAPE:2 * J * 3 + 2 * SHAPE + 3]

    m0 = OC_MANO
    rmesh_cam = slab[:, m0 + MC_RMESH:m0 + MC_RMESH + V * 3].reshape(B, V, 3)
    rjoint_cam = slab[:, m0 + MC_RJC:m0 + MC_RJC + J * 3].reshape(B, J, 3)
    rroot_cam = slab[:, m0 + MC_RROOT:m0 + MC_RROOT + 3].reshape(B, 1, 3)
    lmesh_cam = slab[:, m0 + MC_LMESH:m0 + MC_LMESH + V * 3].reshape(B, V, 3)
    ljoint_cam = slab[:, m0 + MC_LJC:m0 + MC_LJC + J * 3].reshape(B, J, 3)
    lroot_cam = slab[:, m0 + MC_LROOT:m0 + MC_LROOT + 3].reshape(B, 1, 3)
    mano_pose = slab[:, m0 + MC_POSE:m0 + MC_POSE + 3 * N6]
    rroot_pose = mano_pose[:, 0:3]
    rhand_pose = mano_pose[:, 3:3 + POSE3]
    lroot_pose = mano_pose[:, 3 + POSE3:6 + POSE3]
    lhand_pose = mano_pose[:, 6 + POSE3:6 + 2 * POSE3]

    rjoint_proj = slab[:, OC_PROJ:OC_PROJ + 2 * J].reshape(B, J, 2)
    ljoint_proj = slab[:, OC_PROJ + 2 * J:OC_PROJ + 4 * J].reshape(B, J, 2)

    joint_cam = jnp.concatenate([rjoint_cam, ljoint_cam], axis=1)
    joint_proj = jnp.concatenate([rjoint_proj, ljoint_proj], axis=1)

    # test-mode output dict (training losses omitted: no targets here)
    out = {
        'img': img,
        'rel_trans': rel_trans,
        'rjoint_img': rjoint_img,
        'joint_img': joint_img,
        'lmano_mesh_cam': lmesh_cam,
        'rmano_mesh_cam': rmesh_cam,
        'lmano_root_cam': lroot_cam,
        'rmano_root_cam': rroot_cam,
        'lmano_joint_cam': ljoint_cam,
        'rmano_joint_cam': rjoint_cam,
        'lmano_root_pose': lroot_pose,
        'rmano_root_pose': rroot_pose,
        'lmano_hand_pose': lhand_pose,
        'rmano_hand_pose': rhand_pose,
        'lmano_shape': lshape,
        'rmano_shape': rshape,
        'lmano_joint': ljoint_proj,
        'rmano_joint': rjoint_proj,
        'mano_pose': mano_pose,
        'mano_shape': mano_shape,
        'joint_proj': joint_proj,
        'joint_cam': joint_cam,
    }
    return out


if __name__ == "__main__":
    params = init_params(seed=42)
    img = jax.random.normal(jax.random.PRNGKey(0), (B, CIN, H, W), dtype=jnp.float32)

    out = jax.jit(forward)(img, params)
    out = jax.tree_util.tree_map(jax.block_until_ready, out)

    # basic shape / sanity checks
    assert out['joint_img'].shape == (B, 2 * J, 3)
    assert out['joint_proj'].shape == (B, 2 * J, 2)
    assert out['rmano_mesh_cam'].shape == (B, V, 3)
    assert out['lmano_joint_cam'].shape == (B, J, 3)
    assert out['rmano_root_cam'].shape == (B, 1, 3)
    assert out['mano_pose'].shape == (B, 2 * MANO_J * 3)
    assert out['mano_shape'].shape == (B, 2 * SHAPE)
    assert out['rmano_hand_pose'].shape == (B, POSE3)
    for k, v in out.items():
        assert bool(jnp.all(jnp.isfinite(v))), k
    print("KERNEL_OK")
</pallas_src>

<mosaic_0001>
module attributes {stable_mosaic.version = 11 : i64} {
  func.func @_fused_kernel(%arg0: memref<3x512xf32, #tpu.memory_space<vmem>>, %arg1: memref<32x4xf32, #tpu.memory_space<vmem>>, %arg2: memref<33x408xf32, #tpu.memory_space<vmem>>, %arg3: memref<117x696xf32, #tpu.memory_space<vmem>>, %arg4: memref<2x1024xf32, #tpu.memory_space<vmem>>) attributes {dimension_semantics = [], scalar_prefetch = 0 : i64, scratch_operands = 0 : i64, tpu.core_type = #tpu.core_type<tc>} {
    %cst = arith.constant 0.000000e+00 : f32
    %0 = vector.broadcast %cst : f32 to vector<2x1024xf32>
    %c0 = arith.constant 0 : index
    %c0_0 = arith.constant 0 : index
    %1 = vector.load %arg4[%c0, %c0_0] : memref<2x1024xf32, #tpu.memory_space<vmem>>, vector<2x1024xf32>
    tpu.vector_store %arg4[%c0, %c0_0], %0 {strides = array<i32>} : memref<2x1024xf32, #tpu.memory_space<vmem>>, vector<2x1024xf32>,
    %c0_1 = arith.constant 0 : index
    %c0_2 = arith.constant 0 : index
    %2 = vector.load %arg0[%c0_1, %c0_2] : memref<3x512xf32, #tpu.memory_space<vmem>>, vector<3x512xf32>
    %c0_3 = arith.constant 0 : index
    %c0_4 = arith.constant 0 : index
    %3 = vector.load %arg1[%c0_3, %c0_4] : memref<32x4xf32, #tpu.memory_space<vmem>>, vector<32x3xf32>
    %c0_5 = arith.constant 0 : index
    %c3 = arith.constant 3 : index
    %4 = vector.load %arg1[%c0_5, %c3] : memref<32x4xf32, #tpu.memory_space<vmem>>, vector<32x1xf32>
    %cst_6 = arith.constant dense<0.000000e+00> : vector<32x512xf32>
    %5 = tpu.matmul %3, %2, %cst_6 {dimension_numbers = #tpu.dot_dimension_numbers<[1], [0], [0], [1], [0, 0, 1, 1], [], []>} : vector<32x3xf32>, vector<3x512xf32>, vector<32x512xf32> -> vector<32x512xf32>
    %6 = vector.broadcast %4 : vector<32x1xf32> to vector<32x512xf32>
    %7 = arith.addf %5, %6 : vector<32x512xf32>
    %cst_7 = arith.constant 0.000000e+00 : f32
    %8 = vector.broadcast %cst_7 : f32 to vector<32x512xf32>
    %9 = arith.maximumf %7, %8 : vector<32x512xf32>
    %10 = vector.extract_strided_slice %9 {offsets = [0, 0], sizes = [32, 256], strides = [1, 1]} : vector<32x512xf32> to vector<32x256xf32>
    %cst_8 = arith.constant dense<0.000000e+00> : vector<32xf32>
    %11 = vector.multi_reduction <add>, %10, %cst_8 [1] : vector<32x256xf32> to vector<32xf32>
    %12 = vector.shape_cast %11 : vector<32xf32> to vector<32x1xf32>
    %cst_9 = arith.constant 2.560000e+02 : f32
    %13 = vector.broadcast %cst_9 : f32 to vector<32x1xf32>
    %14 = arith.divf %12, %13 : vector<32x1xf32>
    %15 = vector.extract_strided_slice %9 {offsets = [0, 256], sizes = [32, 256], strides = [1, 1]} : vector<32x512xf32> to vector<32x256xf32>
    %cst_10 = arith.constant dense<0.000000e+00> : vector<32xf32>
    %16 = vector.multi_reduction <add>, %15, %cst_10 [1] : vector<32x256xf32> to vector<32xf32>
    %17 = vector.shape_cast %16 : vector<32xf32> to vector<32x1xf32>
    %cst_11 = arith.constant 2.560000e+02 : f32
    %18 = vector.broadcast %cst_11 : f32 to vector<32x1xf32>
    %19 = arith.divf %17, %18 : vector<32x1xf32>
    %20 = tpu.concatenate %14, %19 in 1 : vector<32x1xf32>, vector<32x1xf32> -> vector<32x2xf32>
    %c0_12 = arith.constant 0 : index
    %c0_13 = arith.constant 0 : index
    %21 = vector.load %arg2[%c0_12, %c0_13] : memref<33x408xf32, #tpu.memory_space<vmem>>, vector<32x408xf32>
    %c32 = arith.constant 32 : index
    %c0_14 = arith.constant 0 : index
    %22 = vector.load %arg2[%c32, %c0_14] : memref<33x408xf32, #tpu.memory_space<vmem>>, vector<1x408xf32>
    %cst_15 = arith.constant dense<0.000000e+00> : vector<2x408xf32>
    %23 = tpu.matmul %20, %21, %cst_15 {dimension_numbers = #tpu.dot_dimension_numbers<[0], [0], [1], [1], [0, 1, 1, 1], [], []>} : vector<32x2xf32>, vector<32x408xf32>, vector<2x408xf32> -> vector<2x408xf32>
    %24 = vector.broadcast %22 : vector<1x408xf32> to vector<2x408xf32>
    %25 = arith.addf %23, %24 : vector<2x408xf32>
    %26 = vector.extract_strided_slice %25 {offsets = [0, 256], sizes = [2, 149], strides = [1, 1]} : vector<2x408xf32> to vector<2x149xf32>
    %c0_16 = arith.constant 0 : index
    %c0_17 = arith.constant 0 : index
    %27 = vector.load %arg4[%c0_16, %c0_17] : memref<2x1024xf32, #tpu.memory_space<vmem>>, vector<2x149xf32>
    tpu.vector_store %arg4[%c0_16, %c0_17], %26 {strides = array<i32>} : memref<2x1024xf32, #tpu.memory_space<vmem>>, vector<2x149xf32>,
    %28 = vector.extract_strided_slice %25 {offsets = [0, 0], sizes = [2, 32], strides = [1, 1]} : vector<2x408xf32> to vector<2x32xf32>
    %29 = vector.extract_strided_slice %25 {offsets = [0, 32], sizes = [2, 32], strides = [1, 1]} : vector<2x408xf32> to vector<2x32xf32>
    %30 = vector.extract_strided_slice %25 {offsets = [0, 64], sizes = [2, 32], strides = [1, 1]} : vector<2x408xf32> to vector<2x32xf32>
    %31 = vector.extract_strided_slice %25 {offsets = [0, 96], sizes = [2, 32], strides = [1, 1]} : vector<2x408xf32> to vector<2x32xf32>
    %32 = vector.extract_strided_slice %25 {offsets = [0, 128], sizes = [2, 32], strides = [1, 1]} : vector<2x408xf32> to vector<2x32xf32>
    %33 = vector.extract_strided_slice %25 {offsets = [0, 160], sizes = [2, 32], strides = [1, 1]} : vector<2x408xf32> to vector<2x32xf32>
    %34 = vector.extract_strided_slice %25 {offsets = [0, 192], sizes = [2, 3], strides = [1, 1]} : vector<2x408xf32> to vector<2x3xf32>
    %35 = vector.extract_strided_slice %25 {offsets = [0, 195], sizes = [2, 3], strides = [1, 1]} : vector<2x408xf32> to vector<2x3xf32>
    %36 = vector.extract_strided_slice %25 {offsets = [0, 382], sizes = [2, 20], strides = [1, 1]} : vector<2x408xf32> to vector<2x20xf32>
    %37 = arith.mulf %28, %28 : vector<2x32xf32>
    %38 = arith.mulf %29, %29 : vector<2x32xf32>
    %39 = arith.addf %37, %38 : vector<2x32xf32>
    %40 = arith.mulf %30, %30 : vector<2x32xf32>
    %41 = arith.addf %39, %40 : vector<2x32xf32>
    %cst_18 = arith.constant 9.99999993E-9 : f32
    %42 = vector.broadcast %cst_18 : f32 to vector<2x32xf32>
    %43 = arith.addf %41, %42 : vector<2x32xf32>
    %44 = math.rsqrt %43 : vector<2x32xf32>
    %45 = arith.mulf %28, %44 : vector<2x32xf32>
    %46 = arith.mulf %29, %44 : vector<2x32xf32>
    %47 = arith.mulf %30, %44 : vector<2x32xf32>
    %48 = arith.mulf %45, %31 : vector<2x32xf32>
    %49 = arith.mulf %46, %32 : vector<2x32xf32>
    %50 = arith.addf %48, %49 : vector<2x32xf32>
    %51 = arith.mulf %47, %33 : vector<2x32xf32>
    %52 = arith.addf %50, %51 : vector<2x32xf32>
    %53 = arith.mulf %52, %45 : vector<2x32xf32>
    %54 = arith.subf %31, %53 : vector<2x32xf32>
    %55 = arith.mulf %52, %46 : vector<2x32xf32>
    %56 = arith.subf %32, %55 : vector<2x32xf32>
    %57 = arith.mulf %52, %47 : vector<2x32xf32>
    %58 = arith.subf %33, %57 : vector<2x32xf32>
    %59 = arith.mulf %54, %54 : vector<2x32xf32>
    %60 = arith.mulf %56, %56 : vector<2x32xf32>
    %61 = arith.addf %59, %60 : vector<2x32xf32>
    %62 = arith.mulf %58, %58 : vector<2x32xf32>
    %63 = arith.addf %61, %62 : vector<2x32xf32>
    %cst_19 = arith.constant 9.99999993E-9 : f32
    %64 = vector.broadcast %cst_19 : f32 to vector<2x32xf32>
    %65 = arith.addf %63, %64 : vector<2x32xf32>
    %66 = math.rsqrt %65 : vector<2x32xf32>
    %67 = arith.mulf %54, %66 : vector<2x32xf32>
    %68 = arith.mulf %56, %66 : vector<2x32xf32>
    %69 = arith.mulf %58, %66 : vector<2x32xf32>
    %70 = arith.mulf %46, %69 : vector<2x32xf32>
    %71 = arith.mulf %47, %68 : vector<2x32xf32>
    %72 = arith.subf %70, %71 : vector<2x32xf32>
    %73 = arith.mulf %47, %67 : vector<2x32xf32>
    %74 = arith.mulf %45, %69 : vector<2x32xf32>
    %75 = arith.subf %73, %74 : vector<2x32xf32>
    %76 = arith.mulf %45, %68 : vector<2x32xf32>
    %77 = arith.mulf %46, %67 : vector<2x32xf32>
    %78 = arith.subf %76, %77 : vector<2x32xf32>
    %79 = arith.addf %45, %68 : vector<2x32xf32>
    %80 = arith.addf %79, %78 : vector<2x32xf32>
    %81 = arith.subf %69, %75 : vector<2x32xf32>
    %82 = arith.subf %72, %47 : vector<2x32xf32>
    %83 = arith.subf %46, %67 : vector<2x32xf32>
    %cst_20 = arith.constant 1.000000e+00 : f32
    %84 = vector.broadcast %cst_20 : f32 to vector<2x32xf32>
    %85 = arith.subf %80, %84 : vector<2x32xf32>
    %cst_21 = arith.constant 5.000000e-01 : f32
    %86 = vector.broadcast %cst_21 : f32 to vector<2x32xf32>
    %87 = arith.mulf %85, %86 : vector<2x32xf32>
    %cst_22 = arith.constant -1.000000e+00 : f32
    %cst_23 = arith.constant 1.000000e+00 : f32
    %88 = vector.broadcast %cst_22 : f32 to vector<2x32xf32>
    %89 = arith.maximumf %88, %87 : vector<2x32xf32>
    %90 = vector.broadcast %cst_23 : f32 to vector<2x32xf32>
    %91 = arith.minimumf %90, %89 : vector<2x32xf32>
    %92 = math.absf %91 : vector<2x32xf32>
    %cst_24 = arith.constant -1.872930e-02 : f32
    %93 = vector.broadcast %cst_24 : f32 to vector<2x32xf32>
    %94 = arith.mulf %92, %93 : vector<2x32xf32>
    %cst_25 = arith.constant 7.426100e-02 : f32
    %95 = vector.broadcast %cst_25 : f32 to vector<2x32xf32>
    %96 = arith.addf %95, %94 : vector<2x32xf32>
    %97 = arith.mulf %92, %96 : vector<2x32xf32>
    %cst_26 = arith.constant -0.212114394 : f32
    %98 = vector.broadcast %cst_26 : f32 to vector<2x32xf32>
    %99 = arith.addf %98, %97 : vector<2x32xf32>
    %100 = arith.mulf %92, %99 : vector<2x32xf32>
    %cst_27 = arith.constant 1.57072878 : f32
    %101 = vector.broadcast %cst_27 : f32 to vector<2x32xf32>
    %102 = arith.addf %101, %100 : vector<2x32xf32>
    %cst_28 = arith.constant 1.000000e+00 : f32
    %103 = vector.broadcast %cst_28 : f32 to vector<2x32xf32>
    %104 = arith.subf %103, %92 : vector<2x32xf32>
    %cst_29 = arith.constant 0.000000e+00 : f32
    %105 = vector.broadcast %cst_29 : f32 to vector<2x32xf32>
    %106 = arith.maximumf %104, %105 : vector<2x32xf32>
    %107 = math.sqrt %106 : vector<2x32xf32>
    %108 = arith.mulf %107, %102 : vector<2x32xf32>
    %cst_30 = arith.constant 0.000000e+00 : f32
    %109 = vector.broadcast %cst_30 : f32 to vector<2x32xf32>
    %110 = arith.cmpf oge, %91, %109 : vector<2x32xf32>
    %cst_31 = arith.constant 3.14159274 : f32
    %111 = vector.broadcast %cst_31 : f32 to vector<2x32xf32>
    %112 = arith.subf %111, %108 : vector<2x32xf32>
    %113 = arith.select %110, %108, %112 : vector<2x32xi1>, vector<2x32xf32>
    %114 = arith.mulf %91, %91 : vector<2x32xf32>
    %cst_32 = arith.constant 1.000000e+00 : f32
    %115 = vector.broadcast %cst_32 : f32 to vector<2x32xf32>
    %116 = arith.subf %115, %114 : vector<2x32xf32>
    %cst_33 = arith.constant 0.000000e+00 : f32
    %117 = vector.broadcast %cst_33 : f32 to vector<2x32xf32>
    %118 = arith.maximumf %116, %117 : vector<2x32xf32>
    %119 = math.sqrt %118 : vector<2x32xf32>
    %cst_34 = arith.constant 2.000000e+00 : f32
    %120 = vector.broadcast %cst_34 : f32 to vector<2x32xf32>
    %121 = arith.mulf %120, %119 : vector<2x32xf32>
    %cst_35 = arith.constant 9.99999993E-9 : f32
    %122 = vector.broadcast %cst_35 : f32 to vector<2x32xf32>
    %123 = arith.addf %121, %122 : vector<2x32xf32>
    %124 = tpu.reciprocal %123 {approx = true} : vector<2x32xf32> -> vector<2x32xf32>
    %125 = arith.mulf %113, %124 : vector<2x32xf32>
    %126 = arith.mulf %81, %125 : vector<2x32xf32>
    %127 = arith.mulf %82, %125 : vector<2x32xf32>
    %128 = arith.mulf %83, %125 : vector<2x32xf32>
    %129 = tpu.concatenate %126, %127, %128, %36 in 1 : vector<2x32xf32>, vector<2x32xf32>, vector<2x32xf32>, vector<2x20xf32> -> vector<2x116xf32>
    %c0_36 = arith.constant 0 : index
    %c0_37 = arith.constant 0 : index
    %130 = vector.load %arg3[%c0_36, %c0_37] : memref<117x696xf32, #tpu.memory_space<vmem>>, vector<116x696xf32>
    %c116 = arith.constant 116 : index
    %c0_38 = arith.constant 0 : index
    %131 = vector.load %arg3[%c116, %c0_38] : memref<117x696xf32, #tpu.memory_space<vmem>>, vector<1x696xf32>
    %cst_39 = arith.constant dense<0.000000e+00> : vector<2x696xf32>
    %132 = tpu.matmul %129, %130, %cst_39 {dimension_numbers = #tpu.dot_dimension_numbers<[1], [0], [0], [1], [0, 0, 1, 1], [], []>} : vector<2x116xf32>, vector<116x696xf32>, vector<2x696xf32> -> vector<2x696xf32>
    %133 = vector.broadcast %131 : vector<1x696xf32> to vector<2x696xf32>
    %134 = arith.addf %132, %133 : vector<2x696xf32>
    %135 = vector.extract_strided_slice %134 {offsets = [0, 0], sizes = [2, 612], strides = [1, 1]} : vector<2x696xf32> to vector<2x612xf32>
    %c0_40 = arith.constant 0 : index
    %c256 = arith.constant 256 : index
    %136 = vector.load %arg4[%c0_40, %c256] : memref<2x1024xf32, #tpu.memory_space<vmem>>, vector<2x612xf32>
    tpu.vector_store %arg4[%c0_40, %c256], %135 {strides = array<i32>} : memref<2x1024xf32, #tpu.memory_space<vmem>>, vector<2x612xf32>,
    %137 = vector.extract_strided_slice %134 {offsets = [0, 612], sizes = [2, 84], strides = [1, 1]} : vector<2x696xf32> to vector<2x84xf32>
    %138 = tpu.iota {dimensions = array<i32: 1>} : vector<2x84xi32>
    %c42_i32 = arith.constant 42 : i32
    %139 = vector.broadcast %c42_i32 : i32 to vector<2x84xi32>
    %140 = arith.cmpi slt, %138, %139 : vector<2x84xi32>
    %c1_i32 = arith.constant 1 : i32
    %141 = vector.broadcast %c1_i32 : i32 to vector<2x84xi32>
    %142 = arith.andi %138, %141 : vector<2x84xi32>
    %c0_i32 = arith.constant 0 : i32
    %143 = vector.broadcast %c0_i32 : i32 to vector<2x84xi32>
    %144 = arith.cmpi eq, %142, %143 : vector<2x84xi32>
    %145 = vector.extract_strided_slice %34 {offsets = [0, 0], sizes = [2, 1], strides = [1, 1]} : vector<2x3xf32> to vector<2x1xf32>
    %146 = vector.extract_strided_slice %35 {offsets = [0, 0], sizes = [2, 1], strides = [1, 1]} : vector<2x3xf32> to vector<2x1xf32>
    %147 = vector.shape_cast %145 : vector<2x1xf32> to vector<2x1xf32>
    %148 = vector.broadcast %147 : vector<2x1xf32> to vector<2x84xf32>
    %149 = vector.shape_cast %146 : vector<2x1xf32> to vector<2x1xf32>
    %150 = vector.broadcast %149 : vector<2x1xf32> to vector<2x84xf32>
    %151 = arith.select %140, %148, %150 : vector<2x84xi1>, vector<2x84xf32>
    %152 = vector.extract_strided_slice %34 {offsets = [0, 1], sizes = [2, 1], strides = [1, 1]} : vector<2x3xf32> to vector<2x1xf32>
    %153 = vector.extract_strided_slice %35 {offsets = [0, 1], sizes = [2, 1], strides = [1, 1]} : vector<2x3xf32> to vector<2x1xf32>
    %154 = vector.shape_cast %152 : vector<2x1xf32> to vector<2x1xf32>
    %155 = vector.broadcast %154 : vector<2x1xf32> to vector<2x84xf32>
    %156 = vector.shape_cast %153 : vector<2x1xf32> to vector<2x1xf32>
    %157 = vector.broadcast %156 : vector<2x1xf32> to vector<2x84xf32>
    %158 = arith.select %140, %155, %157 : vector<2x84xi1>, vector<2x84xf32>
    %159 = vector.extract_strided_slice %34 {offsets = [0, 2], sizes = [2, 1], strides = [1, 1]} : vector<2x3xf32> to vector<2x1xf32>
    %160 = vector.extract_strided_slice %35 {offsets = [0, 2], sizes = [2, 1], strides = [1, 1]} : vector<2x3xf32> to vector<2x1xf32>
    %161 = vector.shape_cast %159 : vector<2x1xf32> to vector<2x1xf32>
    %162 = vector.broadcast %161 : vector<2x1xf32> to vector<2x84xf32>
    %163 = vector.shape_cast %160 : vector<2x1xf32> to vector<2x1xf32>
    %164 = vector.broadcast %163 : vector<2x1xf32> to vector<2x84xf32>
    %165 = arith.select %140, %162, %164 : vector<2x84xi1>, vector<2x84xf32>
    %166 = arith.mulf %137, %151 : vector<2x84xf32>
    %167 = arith.select %144, %158, %165 : vector<2x84xi1>, vector<2x84xf32>
    %168 = arith.addf %166, %167 : vector<2x84xf32>
    %c0_41 = arith.constant 0 : index
    %c896 = arith.constant 896 : index
    %169 = vector.load %arg4[%c0_41, %c896] : memref<2x1024xf32, #tpu.memory_space<vmem>>, vector<2x84xf32>
    tpu.vector_store %arg4[%c0_41, %c896], %168 {strides = array<i32>} : memref<2x1024xf32, #tpu.memory_space<vmem>>, vector<2x84xf32>,
    return
  }
}

</mosaic_0001>

<bundles_post_ra>
// kernel: forward.1
= control target key start
LH: loop header
LB: loop body
LE: loop exit
PB: predicated region body
PF: predicated region fallthrough
CT: control target
= control target key end

     0   :  { %v1034_v3 = vmov 3   ;;  %vm63_vm0 = vcmask 1042432   ;;  %vm54_vm1 = vcmask 23552   ;;  %vm243_vm3 = vcmask 7168   ;;  %s1037_s9 = smov 64   ;;  %s1038_s10 = smov 96   ;;  %s1563_s0 = inlined_call_operand.vmem [shape: f32[3,512], index: 0, kind: input, shape index: {}]   ;;  %s1564_s1 = inlined_call_operand.vmem [shape: f32[32,4], index: 1, kind: input, shape index: {}]   ;;  %s1565_s2 = inlined_call_operand.vmem [shape: f32[33,408], index: 2, kind: input, shape index: {}]   ;;  %s1566_s4 = inlined_call_operand.vmem [shape: f32[2,1024], index: 4, kind: output, shape index: {}]   ;;  %s1567_s3 = inlined_call_operand.vmem [shape: f32[117,696], index: 3, kind: input, shape index: {}]  }
   0x1   :  { %v19_v0 = vld [vmem:[%s1563_s0] sm:$0x77]  ;;  %v20_v1 = vld [vmem:[%s1563_s0 + $0x8] sm:$0x77]  ;;  %1013 = vset.pattern.permute.xlu0 %v1034_v3  ;;  %1014 = vset.pattern.permute.xlu1 %v1034_v3  ;;  %v23_v4 = vld [vmem:[%s1564_s1 + $0x10] sm:$0xff]  ;;  %vm307_vm4 = vcmask 261120  }
   0x2   :  { %v21_v2 = vld [vmem:[%s1564_s1] sm:$0xff]  ;;  %47 = vst [vmem:[#allocation1] ss:$2 sm:$0xff] %v19_v0  ;;  %37 = vperm.xlu1 %1014, %v23_v4   ;;  %v22_v9 = vld [vmem:[%s1564_s1 + $0x8] sm:$0xff]  ;;  %v24_v10 = vld [vmem:[%s1564_s1 + $0x18] sm:$0xff]  ;;  %vm394_vm5 = vcmask 1041408  }
   0x3   :  { %27 = vperm.xlu0 %1013, %v21_v2   ;;  %49 = vst [vmem:[#allocation1 + $0x10] ss:$2 sm:$0xff] %v20_v1  ;;  %vm397_vm6 = vcmask 166914   ;;  %s1039_s12 = smov 32   ;;  %s1041_s13 = smov 98  }
   0x4   :  { %vm398_vm7 = vmor %vm397_vm6, %vm394_vm5  ;;  %vm627_vm6 = vcmask 523264   ;;  %s1047_s20 = smov 100   ;;  %s1048_s26 = smov 28  }
   0x9   :  { %v50_v5 = vld.sshfl [vmem:[#allocation1] sm:$0xff pattern:$0x75316420]  ;;  %v51_v6 = vld.sshfl [vmem:[#allocation1 + $0x8] sm:$0xff pattern:$0x75316420] }
   0xa   :  { %957 = vmatpush.msk.msra.mxu0 %vm63_vm0, %v50_v5  ;;  %962 = vmatpush.msk.msra.mxu1 %vm63_vm0, %v51_v6  ;;  %v52_v7 = vld.sshfl [vmem:[#allocation1 + $0x10] sm:$0xff pattern:$0x75316420]  ;;  %v53_v8 = vld.sshfl [vmem:[#allocation1 + $0x18] sm:$0xff pattern:$0x75316420] }
   0xb   :  { %967 = vmatpush.msk.msra.mxu2 %vm63_vm0, %v52_v7  ;;  %972 = vmatpush.msk.msra.mxu3 %vm63_vm0, %v53_v8  ;;  %v1035_v7 = vmov 256.0  }
   0xc   :  { %958 = vmatmul.msk.f32.vlgmr.msra.gmra.mxu0 %vm54_vm1, %v21_v2  ;;  %963 = vmatmul.msk.f32.vlgmr.msra.gmra.mxu1 %vm54_vm1, %v21_v2  ;;  %1022 = vrcp.f32 %v1035_v7 }
   0xd   :  { %968 = vmatmul.msk.f32.vlgmr.msra.gmra.mxu2 %vm54_vm1, %v21_v2  ;;  %973 = vmatmul.msk.f32.vlgmr.msra.gmra.mxu3 %vm54_vm1, %v21_v2 }
   0xe   :  { %32 = vperm.xlu0 %1013, %v22_v9   ;;  %42 = vperm.xlu1 %1014, %v24_v10  }
  0x12   :  { %v1023_v8 = vpop.eup %1022 }
  0x13   :  { %vm221_vm2 = vweird.f32 %v1023_v8 }
  0x14   :  { %959 = vmatmul.msk.f32.gmra.mxu0 %vm54_vm1, %v22_v9  ;;  %964 = vmatmul.msk.f32.gmra.mxu1 %vm54_vm1, %v22_v9 }
  0x15   :  { %969 = vmatmul.msk.f32.gmra.mxu2 %vm54_vm1, %v22_v9  ;;  %974 = vmatmul.msk.f32.gmra.mxu3 %vm54_vm1, %v22_v9  ;;  %v217_v9 = vmul.f32 256.0, %v1023_v8 }
  0x1c   :  { %960 = vmatmul.msk.f32.gmra.mxu0 %vm54_vm1, %v23_v4  ;;  %965 = vmatmul.msk.f32.gmra.mxu1 %vm54_vm1, %v23_v4 }
  0x1d   :  { %970 = vmatmul.msk.f32.gmra.mxu2 %vm54_vm1, %v23_v4  ;;  %975 = vmatmul.msk.f32.gmra.mxu3 %vm54_vm1, %v23_v4 }
  0x24   :  { %961 = vmatmul.msk.f32.gmra.mxu0 %vm54_vm1, %v24_v10  ;;  %966 = vmatmul.msk.f32.gmra.mxu1 %vm54_vm1, %v24_v10 }
  0x25   :  { %971 = vmatmul.msk.f32.gmra.mxu2 %vm54_vm1, %v24_v10  ;;  %976 = vmatmul.msk.f32.gmra.mxu3 %vm54_vm1, %v24_v10  ;;  %v218_v10 = vsub.f32 1.0, %v217_v9 }
  0x74   :  { %v38_v34 = vpop.permute.xlu1 %37 }
  0x75   :  { %v28_v11 = vpop.permute.xlu0 %27 }
  0x80   :  { %v33_v19 = vpop.permute.xlu0 %32  ;;  %v43_v57 = vpop.permute.xlu1 %42 }
  0x89   :  { %v89_v12 = vpop.f32.mrf.mxu0  ;;  %v118_v13 = vpop.f32.mrf.mxu1 }
  0x8a   :  { %v90_v14 = vadd.f32 %v89_v12, %v28_v11  ;;  %v119_v15 = vadd.f32 %v118_v13, %v28_v11 }
  0x8c   :  { %v188_v16 = vmax.f32 %v90_v14, 0.0  ;;  %v189_v17 = vmax.f32 %v119_v15, 0.0 }
  0x8e   :  { %v204_v18 = vadd.f32 %v189_v17, %v188_v16 }
  0x90   :  { %v147_v20 = vpop.f32.mrf.mxu2  ;;  %v176_v21 = vpop.f32.mrf.mxu3  ;;  %205 = vadd.xlane.f32.xlu2 %v204_v18 }
  0x91   :  { %v148_v22 = vadd.f32 %v147_v20, %v28_v11  ;;  %v177_v23 = vadd.f32 %v176_v21, %v28_v11  ;;  %v92_v24 = vpop.f32.mrf.mxu0  ;;  %v121_v25 = vpop.f32.mrf.mxu1  ;;  %v219_v11 = vmul.f32 %v1023_v8, %v218_v10  ;;  %v256_v20 = vld [vmem:[%s1565_s2 + $0x40] sm:$0xff]  ;;  %v261_v21 = vld [vmem:[%s1565_s2 + $0x68] sm:$0xff] }
  0x92   :  { %v93_v26 = vadd.f32 %v92_v24, %v33_v19  ;;  %v122_v27 = vadd.f32 %v121_v25, %v33_v19  ;;  %v252_v24 = vld [vmem:[%s1565_s2 + $0x20] sm:$0xff]  ;;  %343 = vmatpush.msrb.mxu1 %v261_v21  ;;  %v257_v25 = vld [vmem:[%s1565_s2 + $0x48] sm:$0xff] }
  0x93   :  { %v190_v28 = vmax.f32 %v148_v22, 0.0  ;;  %v191_v29 = vmax.f32 %v177_v23, 0.0  ;;  %v220_v13 = vadd.f32 %v1023_v8, %v219_v11  ;;  %v263_v22 = vld [vmem:[%s1565_s2 + $0x78] sm:$0xff] }
  0x94   :  { %v192_v30 = vmax.f32 %v93_v26, 0.0  ;;  %v193_v31 = vmax.f32 %v122_v27, 0.0  ;;  %383 = vmatpush.msrb.mxu3 %v263_v22  ;;  %v259_v26 = vld [vmem:[%s1565_s2 + $0x58] sm:$0xff]  ;;  %344 = vmatpush.msrb.mxu1 %v257_v25 }
  0x95   :  { %v227_v33 = vadd.f32 %v191_v29, %v190_v28  ;;  %v222_v14 = vsel %vm221_vm2, %v1023_v8, %v220_v13  ;;  %v253_v28 = vld [vmem:[%s1565_s2 + $0x28] sm:$0xff]  ;;  %v255_v29 = vld [vmem:[%s1565_s2 + $0x38] sm:$0xff] }
  0x96   :  { %v207_v32 = vadd.f32 %v193_v31, %v192_v30  ;;  %384 = vmatpush.msrb.mxu3 %v259_v26  ;;  %345 = vmatpush.msrb.mxu1 %v253_v28 }
  0x98   :  { %v150_v35 = vpop.f32.mrf.mxu2  ;;  %v179_v36 = vpop.f32.mrf.mxu3  ;;  %208 = vadd.xlane.f32.xlu0 %v207_v32  ;;  %228 = vadd.xlane.f32.xlu2 %v227_v33  ;;  %v248_v32 = vld [vmem:[%s1565_s2] sm:$0xff] }
  0x99   :  { %v151_v37 = vadd.f32 %v150_v35, %v33_v19  ;;  %v180_v38 = vadd.f32 %v179_v36, %v33_v19  ;;  %v95_v39 = vpop.f32.mrf.mxu0  ;;  %v124_v40 = vpop.f32.mrf.mxu1  ;;  %v260_v19 = vld [vmem:[%s1565_s2 + $0x60] sm:$0xff]  ;;  %385 = vmatpush.msrb.mxu3 %v255_v29  ;;  %v251_v35 = vld [vmem:[%s1565_s2 + $0x18] sm:$0xff] }
  0x9a   :  { %v96_v41 = vadd.f32 %v95_v39, %v38_v34  ;;  %v125_v42 = vadd.f32 %v124_v40, %v38_v34  ;;  %323 = vmatpush.msrb.mxu2 %v260_v19 }
  0x9b   :  { %v194_v43 = vmax.f32 %v151_v37, 0.0  ;;  %v195_v44 = vmax.f32 %v180_v38, 0.0  ;;  %386 = vmatpush.msrb.mxu3 %v251_v35 }
  0x9c   :  { %v196_v45 = vmax.f32 %v96_v41, 0.0  ;;  %v197_v46 = vmax.f32 %v125_v42, 0.0  ;;  %324 = vmatpush.msrb.mxu2 %v256_v20 }
  0x9d   :  { %v230_v47 = vadd.f32 %v195_v44, %v194_v43 }
  0x9e   :  { %v210_v48 = vadd.f32 %v197_v46, %v196_v45  ;;  %325 = vmatpush.msrb.mxu2 %v252_v24  ;;  %v262_v46 = vld [vmem:[%s1565_s2 + $0x70] sm:$0xff] }
  0x9f   :  { %231 = vadd.xlane.f32.xlu1 %v230_v47  ;;  %v258_v47 = vld [vmem:[%s1565_s2 + $0x50] sm:$0xff] }
  0xa0   :  { %v153_v49 = vpop.f32.mrf.mxu2  ;;  %v182_v50 = vpop.f32.mrf.mxu3  ;;  %211 = vadd.xlane.f32.xlu2 %v210_v48  ;;  %326 = vmatpush.msrb.mxu2 %v248_v32  ;;  %v254_v48 = vld [vmem:[%s1565_s2 + $0x30] sm:$0xff] }
  0xa1   :  { %v154_v51 = vadd.f32 %v153_v49, %v38_v34  ;;  %v183_v52 = vadd.f32 %v182_v50, %v38_v34  ;;  %v98_v55 = vpop.f32.mrf.mxu0  ;;  %v127_v56 = vpop.f32.mrf.mxu1  ;;  %v249_v34 = vld [vmem:[%s1565_s2 + $0x8] sm:$0xff]  ;;  %v250_v49 = vld [vmem:[%s1565_s2 + $0x10] sm:$0xff] }
  0xa2   :  { %v99_v58 = vadd.f32 %v98_v55, %v43_v57  ;;  %v128_v59 = vadd.f32 %v127_v56, %v43_v57  ;;  %346 = vmatpush.msrb.mxu1 %v249_v34  ;;  %363 = vmatpush.msra.mxu2 %v262_v46 }
  0xa3   :  { %v198_v53 = vmax.f32 %v154_v51, 0.0  ;;  %v199_v54 = vmax.f32 %v183_v52, 0.0  ;;  %v1036_v51 = vmov 0.0   ;;  %v977_v52 = vld [vmem:[%s1565_s2 + $0x80] ss:$8 sm:$0xf] }
  0xa4   :  { %v200_v61 = vmax.f32 %v99_v58, 0.0  ;;  %v201_v62 = vmax.f32 %v128_v59, 0.0  ;;  %364 = vmatpush.msra.mxu2 %v258_v47  ;;  %17 = vst [vmem:[%s1566_s4] sm:$0xff] %v1036_v51  ;;  %v270_v56 = vperm.slane %v977_v52, 3  ;;  %v268_v13 = vperm.slane %v977_v52, 1 }
  0xa5   :  { %v233_v60 = vadd.f32 %v199_v54, %v198_v53  ;;  %18 = vst [vmem:[%s1566_s4 + $0x8] sm:$0xff] %v1036_v51  ;;  %v267_v53 = vperm.slane %v977_v52, 0 }
  0xa6   :  { %v213_v3 = vadd.f32 %v201_v62, %v200_v61  ;;  %365 = vmatpush.msra.mxu2 %v254_v48 }
  0xa8   :  { %234 = vadd.xlane.f32.xlu2 %v233_v60  ;;  %v156_v63 = vpop.f32.mrf.mxu2  ;;  %v185_v0 = vpop.f32.mrf.mxu3  ;;  %366 = vmatpush.msra.mxu2 %v250_v49  ;;  %v269_v60 = vperm.slane %v977_v52, 2 }
  0xa9   :  { %v157_v1 = vadd.f32 %v156_v63, %v43_v57  ;;  %v186_v2 = vadd.f32 %v185_v0, %v43_v57 }
  0xab   :  { %v202_v4 = vmax.f32 %v157_v1, 0.0  ;;  %v203_v5 = vmax.f32 %v186_v2, 0.0 }
  0xad   :  { %v236_v6 = vadd.f32 %v203_v5, %v202_v4 }
  0xb0   :  { %214 = vadd.xlane.f32.xlu2 %v213_v3 }
  0xb8   :  { %237 = vadd.xlane.f32.xlu2 %v236_v6 }
 0x103   :  { %v206_v12 = vpop.xlane.xlu2 %205 }
 0x104   :  { %v223_v16 = vmul.f32 %v222_v14, %v206_v12 }
 0x10b   :  { %v229_v15 = vpop.xlane.xlu2 %228  ;;  %v209_v23 = vpop.xlane.xlu0 %208 }
 0x10c   :  { %v239_v17 = vmul.f32 %v229_v15, %v222_v14  ;;  %v224_v33 = vmul.f32 %v222_v14, %v209_v23 }
 0x10e   :  { %v244_v18 = vsel %vm243_vm3, %v223_v16, %v239_v17 }
 0x10f   :  { %275 = vxpose.xlu2.b32.start [1/4] (short) (narrow) %v244_v18, 8 }
 0x112   :  { %v232_v27 = vpop.xlane.xlu1 %231 }
 0x113   :  { %v240_v30 = vmul.f32 %v232_v27, %v222_v14  ;;  %v212_v31 = vpop.xlane.xlu2 %211 }
 0x114   :  { %v225_v38 = vmul.f32 %v222_v14, %v212_v31 }
 0x115   :  { %v245_v36 = vsel %vm243_vm3, %v224_v33, %v240_v30 }
 0x117   :  { %276 = vxpose.xlu2.b32.cont [2/4] (short) (narrow) %v245_v36, 8 }
 0x11b   :  { %v235_v37 = vpop.xlane.xlu2 %234 }
 0x11c   :  { %v241_v39 = vmul.f32 %v235_v37, %v222_v14 }
 0x11e   :  { %v246_v40 = vsel %vm243_vm3, %v225_v38, %v241_v39 }
 0x11f   :  { %277 = vxpose.xlu2.b32.cont [3/4] (short) (narrow) %v246_v40, 8 }
 0x123   :  { %v215_v41 = vpop.xlane.xlu2 %214 }
 0x124   :  { %v226_v43 = vmul.f32 %v222_v14, %v215_v41 }
 0x12b   :  { %v238_v42 = vpop.xlane.xlu2 %237 }
 0x12c   :  { %v242_v44 = vmul.f32 %v238_v42, %v222_v14 }
 0x12e   :  { %v247_v45 = vsel %vm243_vm3, %v226_v43, %v242_v44  ;;  %vm742_vm3 = vcmask 1043456  }
 0x12f   :  { %278 = vxpose.xlu2.b32.end [4/4] (short) (narrow) %v247_v45, 8 }
 0x1b0   :  { %v291_v50 = vpop.trf.xlu2 }
 0x1b1   :  { %978 = vmatmul.msk.f32.vlgmr.msrb.gmra.mxu2 %vm307_vm4, %v291_v50  ;;  %979 = vmatmul.msk.f32.vlgmr.msrb.gmra.mxu1 %vm307_vm4, %v291_v50 }
 0x1b2   :  { %981 = vmatmul.msk.f32.vlgmr.msrb.gmra.mxu3 %vm307_vm4, %v291_v50 }
 0x1b9   :  { %980 = vmatmul.msk.f32.vlgmr.msra.gmra.mxu2 %vm307_vm4, %v291_v50 }
 0x22e   :  { %v348_v14 = vpop.f32.mrf.mxu1 }
 0x22f   :  { %v1192_v15 = vadd.f32 %v348_v14, %v268_v13 }
 0x234   :  { %v328_v54 = vpop.f32.mrf.mxu2 }
 0x235   :  { %v1173_v55 = vadd.f32 %v328_v54, %v267_v53  ;;  %v388_v57 = vpop.f32.mrf.mxu3 }
 0x236   :  { %v1177_v59 = vadd.f32 %v388_v57, %v270_v56 }
 0x237   :  { %v400_v58 = vmul.f32 %v1173_v55, %v1173_v55 }
 0x238   :  { %v393_v62 = vrot.slane %v1177_v59, 6 }
 0x239   :  { %406 = vrot.lane.b32.xlu1 %v400_v58, %s1037_s9  ;;  %402 = vrot.lane.b32.xlu0 %v400_v58, %s1038_s10 }
 0x23c   :  { %v368_v61 = vpop.f32.mrf.mxu2 }
 0x23d   :  { %v1182_v63 = vadd.f32 %v368_v61, %v269_v60 }
 0x23f   :  { %v395_v0 = vsel %vm394_vm5, %v1182_v63, %v393_v62 }
 0x240   :  { %399 = vst.msk [vmem:[%s1566_s4] sm:$0xf] %vm398_vm7, %v395_v0  ;;  %vm623_vm7 = vcmask 801792  }
 0x2ab   :  { %v403_v1 = vpop.permute.xlu0 %402  ;;  %v407_v3 = vpop.permute.xlu1 %406 }
 0x2ac   :  { %v405_v2 = vadd.f32 %v403_v1, %v400_v58 }
 0x2ae   :  { %v409_v4 = vadd.f32 %v407_v3, %v405_v2 }
 0x2b0   :  { %v410_v5 = vadd.f32 1e-08, %v409_v4 }
 0x2b2   :  { %1024 = vrsqrt.f32 %v410_v5  ;;  %vm417_vm9 = vweird.f32 %v410_v5 }
 0x2b8   :  { %v1025_v6 = vpop.eup %1024 }
 0x2b9   :  { %v412_v7 = vmul.f32 %v1025_v6, %v410_v5  ;;  %vm418_vm8 = vweird.f32 %v1025_v6 }
 0x2ba   :  { %vm419_vm10 = vmor %vm417_vm9, %vm418_vm8  ;;  %vm629_vm8 = vcmask 785408   ;;  %vm738_vm9 = vcmask 949248  }
 0x2bb   :  { %v413_v8 = vmul.f32 %v1025_v6, %v412_v7 }
 0x2bd   :  { %v414_v9 = vmul.f32 0.5, %v413_v8 }
 0x2bf   :  { %v415_v10 = vsub.f32 1.5, %v414_v9 }
 0x2c1   :  { %v416_v11 = vmul.f32 %v1025_v6, %v415_v10 }
 0x2c3   :  { %v420_v12 = vsel %vm419_vm10, %v1025_v6, %v416_v11 }
 0x2c4   :  { %427 = vrot.lane.b32.xlu1 %v420_v12, %s1037_s9  ;;  %423 = vrot.lane.b32.xlu0 %v420_v12, %s1039_s12  ;;  %v421_v24 = vmul.f32 %v420_v12, %v1173_v55 }
 0x2cc   :  { %432 = vrot.lane.b32.xlu1 %v1173_v55, %s1039_s12  ;;  %437 = vrot.lane.b32.xlu0 %v1192_v15, %s1039_s12 }
 0x336   :  { %v424_v16 = vpop.permute.xlu0 %423  ;;  %v428_v17 = vpop.permute.xlu1 %427 }
 0x337   :  { %v1199_v18 = vmul.f32 %v428_v17, %v1173_v55  ;;  %v1202_v19 = vmul.f32 %v424_v16, %v1173_v55 }
 0x33e   :  { %v438_v20 = vpop.permute.xlu0 %437  ;;  %v433_v23 = vpop.permute.xlu1 %432 }
 0x33f   :  { %v440_v21 = vmul.f32 %v438_v20, %v1202_v19  ;;  %v446_v22 = vmul.f32 %v438_v20, %v1199_v18  ;;  %v435_v25 = vmul.f32 %v433_v23, %v421_v24 }
 0x341   :  { %448 = vrot.lane.b32.xlu1 %v446_v22, %s1037_s9  ;;  %442 = vrot.lane.b32.xlu0 %v440_v21, %s1038_s10 }
 0x349   :  { %459 = vrot.lane.b32.xlu1 %v1202_v19, %s1038_s10  ;;  %465 = vrot.lane.b32.xlu0 %v1199_v18, %s1037_s9 }
 0x3b3   :  { %v449_v26 = vpop.permute.xlu1 %448  ;;  %v443_v27 = vpop.permute.xlu0 %442 }
 0x3b4   :  { %v445_v28 = vadd.f32 %v443_v27, %v435_v25 }
 0x3b6   :  { %v451_v29 = vadd.f32 %v449_v26, %v445_v28 }
 0x3b8   :  { %v452_v30 = vmul.f32 %v451_v29, %v421_v24 }
 0x3ba   :  { %454 = vrot.lane.b32.xlu2 %v452_v30, %s1038_s10 }
 0x3bb   :  { %v460_v31 = vpop.permute.xlu1 %459  ;;  %v466_v32 = vpop.permute.xlu0 %465 }
 0x3bc   :  { %v462_v33 = vmul.f32 %v460_v31, %v451_v29  ;;  %v468_v34 = vmul.f32 %v466_v32, %v451_v29 }
 0x3be   :  { %v463_v35 = vsub.f32 %v1192_v15, %v462_v33  ;;  %470 = vrot.lane.b32.xlu0 %v468_v34, %s1039_s12 }
 0x3c0   :  { %v475_v36 = vmul.f32 %v463_v35, %v463_v35 }
 0x3c2   :  { %477 = vrot.lane.b32.xlu1 %v475_v36, %s1038_s10 }
 0x414   :  { %v455_v40 = vpop.permute.xlu2 %454 }
 0x415   :  { %v457_v41 = vsub.f32 %v1173_v55, %v455_v40 }
 0x417   :  { %v474_v43 = vmul.f32 %v457_v41, %v457_v41 }
 0x430   :  { %v471_v37 = vpop.permute.xlu0 %470 }
 0x431   :  { %v473_v38 = vsub.f32 %v1192_v15, %v471_v37 }
 0x433   :  { %v481_v39 = vmul.f32 %v473_v38, %v473_v38 }
 0x434   :  { %v478_v42 = vpop.permute.xlu1 %477 }
 0x435   :  { %483 = vrot.lane.b32.xlu0 %v481_v39, %s1037_s9  ;;  %v480_v44 = vadd.f32 %v478_v42, %v474_v43 }
 0x4a7   :  { %v484_v45 = vpop.permute.xlu0 %483 }
 0x4a8   :  { %v486_v46 = vadd.f32 %v484_v45, %v480_v44 }
 0x4aa   :  { %v487_v47 = vadd.f32 1e-08, %v486_v46 }
 0x4ac   :  { %1026 = vrsqrt.f32 %v487_v47  ;;  %vm494_vm12 = vweird.f32 %v487_v47 }
 0x4b2   :  { %v1027_v48 = vpop.eup %1026 }
 0x4b3   :  { %v489_v49 = vmul.f32 %v1027_v48, %v487_v47  ;;  %vm495_vm11 = vweird.f32 %v1027_v48 }
 0x4b4   :  { %vm496_vm13 = vmor %vm494_vm12, %vm495_vm11  ;;  %vm894_vm11 = vcmask 812032   ;;  %vm889_vm12 = vcmask 1045508  }
 0x4b5   :  { %v490_v50 = vmul.f32 %v1027_v48, %v489_v49 }
 0x4b7   :  { %v491_v51 = vmul.f32 0.5, %v490_v50 }
 0x4b9   :  { %v492_v52 = vsub.f32 1.5, %v491_v51 }
 0x4bb   :  { %v493_v53 = vmul.f32 %v1027_v48, %v492_v52 }
 0x4bd   :  { %v497_v54 = vsel %vm496_vm13, %v1027_v48, %v493_v53  ;;  %vm948_vm13 = vcmask 228352  }
 0x4be   :  { %504 = vrot.lane.b32.xlu0 %v497_v54, %s1037_s9  ;;  %v498_v55 = vmul.f32 %v497_v54, %v457_v41 }
 0x4c0   :  { %535 = vrot.lane.b32.xlu1 %v498_v55, %s1037_s9 }
 0x4c8   :  { %500 = vrot.lane.b32.xlu1 %v497_v54, %s1039_s12 }
 0x530   :  { %v505_v56 = vpop.permute.xlu0 %504 }
 0x531   :  { %v1223_v57 = vmul.f32 %v505_v56, %v473_v38 }
 0x532   :  { %v1225_v58 = vpop.permute.xlu1 %535 }
 0x533   :  { %v538_v60 = vmul.f32 %v1225_v58, %v1202_v19  ;;  %525 = vrot.lane.b32.xlu1 %v1223_v57, %s1038_s10 }
 0x535   :  { %540 = vrot.lane.b32.xlu0 %v538_v60, %s1038_s10 }
 0x53a   :  { %v501_v61 = vpop.permute.xlu1 %500 }
 0x53b   :  { %v503_v62 = vmul.f32 %v501_v61, %v463_v35  ;;  %v1040_v61 = vmov 67  }
 0x53c   :  { %1016 = vset.pattern.permute.xlu0 %v1040_v61  ;;  %v719_v61 = vld [vmem:[%s1567_s3 + $0x2c0] sm:$0xf] }
 0x53d   :  { %520 = vrot.lane.b32.xlu0 %v498_v55, %s1038_s10  ;;  %v534_v2 = vmul.f32 %v503_v62, %v421_v24  ;;  %v544_v5 = vadd.f32 %v503_v62, %v421_v24 }
 0x545   :  { %510 = vrot.lane.b32.xlu0 %v503_v62, %s1037_s9  ;;  %v555_v62 = vsub.f32 %v1202_v19, %v1225_v58 }
 0x5a5   :  { %v526_v0 = vpop.permute.xlu1 %525 }
 0x5a6   :  { %v528_v1 = vmul.f32 %v526_v0, %v421_v24 }
 0x5a7   :  { %v541_v3 = vpop.permute.xlu0 %540 }
 0x5a8   :  { %v543_v4 = vsub.f32 %v534_v2, %v541_v3  ;;  %530 = vrot.lane.b32.xlu1 %v528_v1, %s1037_s9  ;;  %v1042_v2 = vmov 66  }
 0x5aa   :  { %v545_v6 = vadd.f32 %v544_v5, %v543_v4  ;;  %v1044_v5 = vmov 69  }
 0x5ac   :  { %v982_v7 = vadd.f32 -1.0, %v545_v6  ;;  %v1046_v6 = vmov 68  }
 0x5ae   :  { %v557_v8 = vmul.f32 0.5, %v982_v7  ;;  %v715_v7 = vld [vmem:[%s1567_s3 + $0x2a0] sm:$0xf] }
 0x5af   :  { %v521_v52 = vpop.permute.xlu0 %520  ;;  %986 = vmatpush.msk.msrb.mxu0 %vm742_vm3, %v715_v7  ;;  %v690_v7 = vld [vmem:[%s1567_s3 + $0x1d8] sm:$0xff] }
 0x5b0   :  { %v983_v9 = vclamps-f32 %v557_v8, 1.0  ;;  %v523_v53 = vmul.f32 %v521_v52, %v1199_v18  ;;  %v716_v8 = vld [vmem:[%s1567_s3 + $0x2a8] sm:$0xf]  ;;  %v663_v52 = vld [vmem:[%s1567_s3 + $0x100] sm:$0xff] }
 0x5b1   :  { %988 = vmatpush.msk.msra.mxu1 %vm742_vm3, %v716_v8  ;;  %v657_v8 = vld [vmem:[%s1567_s3 + $0xd0] sm:$0xff] }
 0x5b2   :  { %v560_v10 = vand.u32 2147483647, %v983_v9  ;;  %v585_v11 = vmul.f32 %v983_v9, %v983_v9  ;;  %vm582_vm2 = vcmp.ge.f32.partialorder %v983_v9, 0.0  ;;  %v710_v9 = vld [vmem:[%s1567_s3 + $0x278] sm:$0xff] }
 0x5b3   :  { %783 = vmatpush.msra.mxu1 %v710_v9  ;;  %v683_v9 = vld [vmem:[%s1567_s3 + $0x1a0] sm:$0xff] }
 0x5b4   :  { %v567_v12 = vsub.f32 1.0, %v560_v10  ;;  %v586_v13 = vsub.f32 1.0, %v585_v11  ;;  %v561_v17 = vmul.f32 -0.0187293, %v560_v10  ;;  %v704_v11 = vld [vmem:[%s1567_s3 + $0x248] sm:$0xff] }
 0x5b5   :  { %784 = vmatpush.msra.mxu1 %v704_v11  ;;  %v651_v11 = vld [vmem:[%s1567_s3 + $0xa0] sm:$0xff] }
 0x5b6   :  { %v568_v14 = vmax.f32 %v567_v12, 0.0  ;;  %v587_v16 = vmax.f32 %v586_v13, 0.0  ;;  %v562_v20 = vadd.f32 0.074261, %v561_v17  ;;  %v697_v12 = vld [vmem:[%s1567_s3 + $0x210] sm:$0xff]  ;;  %v698_v13 = vld [vmem:[%s1567_s3 + $0x218] sm:$0xff] }
 0x5b7   :  { %v511_v56 = vpop.permute.xlu0 %510  ;;  %v717_v17 = vld [vmem:[%s1567_s3 + $0x2b0] sm:$0xf]  ;;  %785 = vmatpush.msra.mxu1 %v698_v13 }
 0x5b8   :  { %1028 = vrsqrt.f32 %v587_v16  ;;  %v563_v25 = vmul.f32 %v562_v20, %v560_v10  ;;  %vm595_vm14 = vcmp.eq.f32.partialorder %v587_v16, inf  ;;  %v598_v38 = vand.u32 2147483648, %v587_v16  ;;  %v685_v20 = vld [vmem:[%s1567_s3 + $0x1b0] sm:$0xff]  ;;  %990 = vmatpush.msk.msrb.mxu2 %vm742_vm3, %v717_v17  ;;  %v646_v17 = vld [vmem:[%s1567_s3 + $0x78] sm:$0xff] }
 0x5b9   :  { %1030 = vrsqrt.f32 %v568_v14  ;;  %vm576_vm15 = vcmp.eq.f32.partialorder %v568_v14, inf  ;;  %v579_v39 = vand.u32 2147483648, %v568_v14  ;;  %vm597_vm0 = vcmp.eq.f32.partialorder %v587_v16, 0.0  ;;  %v677_v13 = vld [vmem:[%s1567_s3 + $0x170] sm:$0xff] }
 0x5ba   :  { %v564_v30 = vadd.f32 -0.2121144, %v563_v25  ;;  %vm578_vm1 = vcmp.eq.f32.partialorder %v568_v14, 0.0  ;;  %v513_v60 = vmul.f32 %v511_v56, %v1199_v18  ;;  %v705_v25 = vld [vmem:[%s1567_s3 + $0x250] sm:$0xff]  ;;  %v631_v56 = vld [vmem:[%s1567_s3] sm:$0xff] }
 0x5bc   :  { %v565_v35 = vmul.f32 %v564_v30, %v560_v10  ;;  %v703_v10 = vld [vmem:[%s1567_s3 + $0x240] sm:$0xff]  ;;  %v700_v30 = vld [vmem:[%s1567_s3 + $0x228] sm:$0xff] }
 0x5be   :  { %v1029_v21 = vpop.eup %1028  ;;  %v566_v43 = vadd.f32 1.5707288, %v565_v35  ;;  %v668_v35 = vld [vmem:[%s1567_s3 + $0x128] sm:$0xff] }
 0x5bf   :  { %v1031_v22 = vpop.eup %1030  ;;  %v589_v23 = vmul.f32 %v1029_v21, %v587_v16 }
 0x5c0   :  { %v570_v24 = vmul.f32 %v1031_v22, %v568_v14 }
 0x5c1   :  { %v590_v26 = vmul.f32 %v1029_v21, %v589_v23  ;;  %v712_v23 = vld [vmem:[%s1567_s3 + $0x288] sm:$0xff] }
 0x5c2   :  { %v571_v27 = vmul.f32 %v1031_v22, %v570_v24  ;;  %v679_v24 = vld [vmem:[%s1567_s3 + $0x180] sm:$0xff] }
 0x5c3   :  { %v591_v28 = vmul.f32 0.5, %v590_v26  ;;  %v706_v26 = vld [vmem:[%s1567_s3 + $0x258] sm:$0xff] }
 0x5c4   :  { %v572_v29 = vmul.f32 0.5, %v571_v27  ;;  %v680_v27 = vld [vmem:[%s1567_s3 + $0x188] sm:$0xff] }
 0x5c5   :  { %v592_v31 = vsub.f32 1.5, %v591_v28  ;;  %v699_v28 = vld [vmem:[%s1567_s3 + $0x220] sm:$0xff] }
 0x5c6   :  { %v573_v32 = vsub.f32 1.5, %v572_v29  ;;  %v673_v29 = vld [vmem:[%s1567_s3 + $0x150] sm:$0xff] }
 0x5c7   :  { %v593_v33 = vmul.f32 %v1029_v21, %v592_v31  ;;  %v711_v21 = vld [vmem:[%s1567_s3 + $0x280] sm:$0xff]  ;;  %v674_v31 = vld [vmem:[%s1567_s3 + $0x158] sm:$0xff] }
 0x5c8   :  { %v574_v34 = vmul.f32 %v1031_v22, %v573_v32  ;;  %v686_v22 = vld [vmem:[%s1567_s3 + $0x1b8] sm:$0xff]  ;;  %803 = vmatpush.msrb.mxu2 %v711_v21  ;;  %v693_v32 = vld [vmem:[%s1567_s3 + $0x1f0] sm:$0xff]  ;;  %v639_v21 = vld [vmem:[%s1567_s3 + $0x40] sm:$0xff] }
 0x5c9   :  { %v594_v36 = vmul.f32 %v593_v33, %v587_v16  ;;  %v667_v33 = vld [vmem:[%s1567_s3 + $0x120] sm:$0xff] }
 0x5ca   :  { %v575_v37 = vmul.f32 %v574_v34, %v568_v14  ;;  %804 = vmatpush.msrb.mxu2 %v705_v25  ;;  %v694_v34 = vld [vmem:[%s1567_s3 + $0x1f8] sm:$0xff]  ;;  %v633_v25 = vld [vmem:[%s1567_s3 + $0x10] sm:$0xff] }
 0x5cb   :  { %v596_v40 = vsel %vm595_vm14, %v587_v16, %v594_v36  ;;  %v692_v16 = vld [vmem:[%s1567_s3 + $0x1e8] sm:$0xff]  ;;  %v687_v36 = vld [vmem:[%s1567_s3 + $0x1c0] sm:$0xff]  ;;  %vm951_vm14 = vcmask 680960  }
 0x5cc   :  { %v577_v41 = vsel %vm576_vm15, %v568_v14, %v575_v37  ;;  %v599_v42 = vsel %vm597_vm0, %v598_v38, %v596_v40  ;;  %v691_v14 = vld [vmem:[%s1567_s3 + $0x1e0] sm:$0xff]  ;;  %786 = vmatpush.msra.mxu1 %v692_v16  ;;  %805 = vmatpush.msrb.mxu2 %v699_v28  ;;  %v661_v37 = vld [vmem:[%s1567_s3 + $0xf0] sm:$0xff]  ;;  %v688_v38 = vld [vmem:[%s1567_s3 + $0x1c8] sm:$0xff] }
 0x5cd   :  { %v580_v44 = vsel %vm578_vm1, %v579_v39, %v577_v41  ;;  %v600_v45 = vmul.f32 2.0, %v599_v42  ;;  %v662_v39 = vld [vmem:[%s1567_s3 + $0xf8] sm:$0xff]  ;;  %v681_v40 = vld [vmem:[%s1567_s3 + $0x190] sm:$0xff]  ;;  %v655_v41 = vld [vmem:[%s1567_s3 + $0xc0] sm:$0xff] }
 0x5ce   :  { %v581_v46 = vmul.f32 %v580_v44, %v566_v43  ;;  %787 = vmatpush.msra.mxu1 %v686_v22  ;;  %806 = vmatpush.msrb.mxu2 %v693_v32  ;;  %v682_v42 = vld [vmem:[%s1567_s3 + $0x198] sm:$0xff]  ;;  %v656_v43 = vld [vmem:[%s1567_s3 + $0xc8] sm:$0xff]  ;;  %v675_v44 = vld [vmem:[%s1567_s3 + $0x160] sm:$0xff] }
 0x5cf   :  { %v601_v47 = vadd.f32 1e-08, %v600_v45  ;;  %v649_v45 = vld [vmem:[%s1567_s3 + $0x90] sm:$0xff]  ;;  %v640_v22 = vld [vmem:[%s1567_s3 + $0x48] sm:$0xff] }
 0x5d0   :  { %v583_v48 = vsub.f32 3.1415927, %v581_v46  ;;  %788 = vmatpush.msra.mxu1 %v680_v27  ;;  %807 = vmatpush.msrb.mxu2 %v687_v36  ;;  %v645_v16 = vld [vmem:[%s1567_s3 + $0x70] sm:$0xff]  ;;  %v659_v27 = vld [vmem:[%s1567_s3 + $0xe0] sm:$0xff]  ;;  %v660_v28 = vld [vmem:[%s1567_s3 + $0xe8] sm:$0xff] }
 0x5d1   :  { %1032 = vrcp.f32 %v601_v47  ;;  %v650_v47 = vld [vmem:[%s1567_s3 + $0x98] sm:$0xff]  ;;  %v648_v32 = vld [vmem:[%s1567_s3 + $0x88] sm:$0xff] }
 0x5d2   :  { %v584_v50 = vsel %vm582_vm2, %v581_v46, %v583_v48  ;;  %789 = vmatpush.msra.mxu1 %v674_v31  ;;  %808 = vmatpush.msrb.mxu2 %v681_v40  ;;  %v676_v46 = vld [vmem:[%s1567_s3 + $0x168] sm:$0xff]  ;;  %v669_v48 = vld [vmem:[%s1567_s3 + $0x130] sm:$0xff]  ;;  %v647_v31 = vld [vmem:[%s1567_s3 + $0x80] sm:$0xff] }
 0x5d3   :  { %v636_v36 = vld [vmem:[%s1567_s3 + $0x28] sm:$0xff] }
 0x5d4   :  { %790 = vmatpush.msra.mxu1 %v668_v35  ;;  %809 = vmatpush.msrb.mxu2 %v675_v44  ;;  %v635_v35 = vld [vmem:[%s1567_s3 + $0x20] sm:$0xff] }
 0x5d6   :  { %791 = vmatpush.msra.mxu1 %v662_v39  ;;  %810 = vmatpush.msrb.mxu2 %v669_v48  ;;  %v508_v39 = vmul.f32 %v1223_v57, %v1202_v19 }
 0x5d7   :  { %v1033_v49 = vpop.eup %1032 }
 0x5d8   :  { %v603_v51 = vmul.f32 %v1033_v49, %v584_v50  ;;  %792 = vmatpush.msra.mxu1 %v656_v43  ;;  %v643_v49 = vld [vmem:[%s1567_s3 + $0x60] sm:$0xff]  ;;  %v670_v50 = vld [vmem:[%s1567_s3 + $0x138] sm:$0xff]  ;;  %811 = vmatpush.msrb.mxu2 %v663_v52 }
 0x5da   :  { %605 = vrot.lane.b32.xlu0 %v603_v51, %s1039_s12  ;;  %v644_v51 = vld [vmem:[%s1567_s3 + $0x68] sm:$0xff]  ;;  %793 = vmatpush.msra.mxu1 %v650_v47  ;;  %v896_v47 = vlaneseq }
 0x5db   :  { %812 = vmatpush.msrb.mxu2 %v657_v8 }
 0x5dc   :  { %794 = vmatpush.msra.mxu1 %v644_v51  ;;  %v897_v52 = vand.u32 127, %v896_v47 }
 0x5dd   :  { %813 = vmatpush.msrb.mxu2 %v651_v11 }
 0x5de   :  { %vm898_vm10 = vcmp.lt.s32.totalorder %v897_v52, 42 }
 0x5df   :  { %814 = vmatpush.msrb.mxu2 %v645_v16 }
 0x5e1   :  { %815 = vmatpush.msrb.mxu2 %v639_v21 }
 0x5e2   :  { %551 = vrot.lane.b32.xlu0 %v1199_v18, %s1038_s10  ;;  %v1043_v18 = vmov 64  }
 0x5e3   :  { %1015 = vset.pattern.permute.xlu1 %v1043_v18  ;;  %v707_v18 = vld [vmem:[%s1567_s3 + $0x260] sm:$0xff]  ;;  %816 = vmatpush.msrb.mxu2 %v633_v25 }
 0x61a   :  { %v531_v54 = vpop.permute.xlu1 %530 }
 0x61b   :  { %v533_v55 = vsub.f32 %v523_v53, %v531_v54  ;;  %v637_v53 = vld [vmem:[%s1567_s3 + $0x30] sm:$0xff]  ;;  %v664_v54 = vld [vmem:[%s1567_s3 + $0x108] sm:$0xff] }
 0x61d   :  { %547 = vrot.lane.b32.xlu1 %v533_v55, %s1038_s10  ;;  %v638_v55 = vld [vmem:[%s1567_s3 + $0x38] sm:$0xff] }
 0x61e   :  { %795 = vmatpush.msra.mxu1 %v638_v55  ;;  %v899_v55 = vand.u32 1, %v897_v52 }
 0x625   :  { %515 = vrot.lane.b32.xlu1 %v513_v60, %s1038_s10  ;;  %v632_v60 = vld [vmem:[%s1567_s3 + $0x8] sm:$0xff] }
 0x626   :  { %796 = vmatpush.msra.mxu1 %v632_v60 }
 0x64c   :  { %v1244_v0 = vpop.permute.xlu0 %605 }
 0x64d   :  { %v610_v1 = vmul.f32 %v1244_v0, %v555_v62  ;;  %v720_v62 = vld [vmem:[%s1567_s3 + $0x2c8] sm:$0xf] }
 0x64e   :  { %996 = vmatpush.msk.msrb.mxu1 %vm742_vm3, %v720_v62 }
 0x64f   :  { %616 = vrot.lane.b32.xlu0 %v610_v1, %s1039_s12  ;;  %v713_v1 = vld [vmem:[%s1567_s3 + $0x290] sm:$0xff] }
 0x657   :  { %621 = vrot.lane.b32.xlu0 %v1177_v59, %s1041_s13  ;;  %v1045_v59 = vmov 65  }
 0x65f   :  { %906 = vperm.xlu0 %1016, %v1192_v15  }
 0x667   :  { %1019 = vset.pattern.permute.xlu0 %v1042_v2  ;;  %v714_v2 = vld [vmem:[%s1567_s3 + $0x298] sm:$0xff] }
 0x668   :  { %920 = vperm.xlu0 %1019, %v1192_v15   ;;  %863 = vmatpush.msrb.mxu1 %v714_v2  ;;  %v984_v2 = vld [vmem:[%s1567_s3 + $0x2a4] ss:$8 sm:$0xf] }
 0x670   :  { %1021 = vset.pattern.permute.xlu0 %v1044_v5 }
 0x68f   :  { %v548_v3 = vpop.permute.xlu1 %547 }
 0x690   :  { %v550_v58 = vsub.f32 %v1223_v57, %v548_v3  ;;  %v708_v3 = vld [vmem:[%s1567_s3 + $0x268] sm:$0xff] }
 0x691   :  { %864 = vmatpush.msrb.mxu1 %v708_v3 }
 0x692   :  { %v608_v4 = vmul.f32 %v1244_v0, %v550_v58  ;;  %v701_v58 = vld [vmem:[%s1567_s3 + $0x230] sm:$0xff] }
 0x694   :  { %612 = vrot.lane.b32.xlu1 %v608_v4, %s1038_s10  ;;  %v702_v4 = vld [vmem:[%s1567_s3 + $0x238] sm:$0xff] }
 0x695   :  { %865 = vmatpush.msrb.mxu1 %v702_v4 }
 0x69c   :  { %619 = vrot.lane.b32.xlu1 %v1182_v63, %s1041_s13  ;;  %v709_v63 = vld [vmem:[%s1567_s3 + $0x270] sm:$0xff] }
 0x69d   :  { %763 = vmatpush.msrb.mxu0 %v709_v63  ;;  %v658_v63 = vld [vmem:[%s1567_s3 + $0xd8] sm:$0xff] }
 0x69f   :  { %764 = vmatpush.msrb.mxu0 %v703_v10  ;;  %v684_v10 = vld [vmem:[%s1567_s3 + $0x1a8] sm:$0xff] }
 0x6a1   :  { %765 = vmatpush.msrb.mxu0 %v697_v12  ;;  %v652_v12 = vld [vmem:[%s1567_s3 + $0xa8] sm:$0xff] }
 0x6a3   :  { %766 = vmatpush.msrb.mxu0 %v691_v14  ;;  %v678_v14 = vld [vmem:[%s1567_s3 + $0x178] sm:$0xff] }
 0x6a4   :  { %902 = vperm.xlu1 %1015, %v1192_v15  }
 0x6a5   :  { %767 = vmatpush.msrb.mxu0 %v685_v20  ;;  %v672_v20 = vld [vmem:[%s1567_s3 + $0x148] sm:$0xff] }
 0x6a7   :  { %768 = vmatpush.msrb.mxu0 %v679_v24  ;;  %v666_v24 = vld [vmem:[%s1567_s3 + $0x118] sm:$0xff] }
 0x6a9   :  { %769 = vmatpush.msrb.mxu0 %v673_v29  ;;  %v653_v29 = vld [vmem:[%s1567_s3 + $0xb0] sm:$0xff] }
 0x6ab   :  { %770 = vmatpush.msrb.mxu0 %v667_v33  ;;  %v641_v33 = vld [vmem:[%s1567_s3 + $0x50] sm:$0xff] }
 0x6ac   :  { %1017 = vset.pattern.permute.xlu1 %v1045_v59  ;;  %v696_v59 = vld [vmem:[%s1567_s3 + $0x208] sm:$0xff] }
 0x6ad   :  { %911 = vperm.xlu1 %1017, %v1192_v15   ;;  %771 = vmatpush.msrb.mxu0 %v661_v37  ;;  %v552_v37 = vpop.permute.xlu0 %551 }
 0x6ae   :  { %866 = vmatpush.msrb.mxu1 %v696_v59 }
 0x6af   :  { %772 = vmatpush.msrb.mxu0 %v655_v41 }
 0x6b0   :  { %867 = vmatpush.msrb.mxu1 %v690_v7 }
 0x6b1   :  { %773 = vmatpush.msrb.mxu0 %v649_v45 }
 0x6b2   :  { %868 = vmatpush.msrb.mxu1 %v684_v10 }
 0x6b3   :  { %774 = vmatpush.msrb.mxu0 %v643_v49 }
 0x6b4   :  { %869 = vmatpush.msrb.mxu1 %v678_v14 }
 0x6b5   :  { %1018 = vset.pattern.permute.xlu1 %v1046_v6  ;;  %775 = vmatpush.msrb.mxu0 %v637_v53  ;;  %v689_v6 = vld [vmem:[%s1567_s3 + $0x1d0] sm:$0xff] }
 0x6b6   :  { %915 = vperm.xlu1 %1018, %v1192_v15   ;;  %870 = vmatpush.msrb.mxu1 %v672_v20 }
 0x6b7   :  { %776 = vmatpush.msrb.mxu0 %v631_v56 }
 0x6b8   :  { %871 = vmatpush.msrb.mxu1 %v666_v24 }
 0x6b9   :  { %994 = vmatpush.msk.msra.mxu0 %vm742_vm3, %v719_v61 }
 0x6ba   :  { %872 = vmatpush.msrb.mxu1 %v660_v28 }
 0x6bb   :  { %843 = vmatpush.msra.mxu0 %v713_v1 }
 0x6bd   :  { %844 = vmatpush.msra.mxu0 %v707_v18  ;;  %v985_v18 = vld [vmem:[%s1567_s3 + $0x2a4] ss:$8 sm:$0x30] }
 0x6be   :  { %1020 = vset.pattern.permute.xlu1 %v1044_v5  ;;  %v695_v5 = vld [vmem:[%s1567_s3 + $0x200] sm:$0xff]  ;;  %v724_v3 = vor.u32 %v985_v18, %v984_v2 }
 0x6bf   :  { %924 = vperm.xlu1 %1020, %v1192_v15   ;;  %v718_v15 = vld [vmem:[%s1567_s3 + $0x2b8] sm:$0xf]  ;;  %845 = vmatpush.msra.mxu0 %v701_v58 }
 0x6c0   :  { %992 = vmatpush.msk.msra.mxu3 %vm742_vm3, %v718_v15  ;;  %v671_v15 = vld [vmem:[%s1567_s3 + $0x140] sm:$0xff]  ;;  %v727_v4 = vperm.slane %v724_v3, 1  ;;  %v729_v7 = vperm.slane %v724_v3, 3  ;;  %v730_v8 = vperm.slane %v724_v3, 4  ;;  %v731_v24 = vperm.slane %v724_v3, 5 }
 0x6c1   :  { %846 = vmatpush.msra.mxu0 %v695_v5  ;;  %v617_v41 = vpop.permute.xlu0 %616 }
 0x6c2   :  { %823 = vmatpush.msra.mxu3 %v712_v23  ;;  %v665_v23 = vld [vmem:[%s1567_s3 + $0x110] sm:$0xff] }
 0x6c3   :  { %847 = vmatpush.msra.mxu0 %v689_v6  ;;  %v728_v6 = vperm.slane %v724_v3, 2 }
 0x6c4   :  { %824 = vmatpush.msra.mxu3 %v706_v26  ;;  %v634_v26 = vld [vmem:[%s1567_s3 + $0x18] sm:$0xff] }
 0x6c5   :  { %848 = vmatpush.msra.mxu0 %v683_v9 }
 0x6c6   :  { %825 = vmatpush.msra.mxu3 %v700_v30  ;;  %v654_v30 = vld [vmem:[%s1567_s3 + $0xb8] sm:$0xff] }
 0x6c7   :  { %849 = vmatpush.msra.mxu0 %v677_v13  ;;  %873 = vmatpush.msrb.mxu1 %v654_v30 }
 0x6c8   :  { %826 = vmatpush.msra.mxu3 %v694_v34  ;;  %v642_v34 = vld [vmem:[%s1567_s3 + $0x58] sm:$0xff] }
 0x6c9   :  { %850 = vmatpush.msra.mxu0 %v671_v15  ;;  %874 = vmatpush.msrb.mxu1 %v648_v32  ;;  %v622_v45 = vpop.permute.xlu0 %621 }
 0x6ca   :  { %827 = vmatpush.msra.mxu3 %v688_v38  ;;  %v516_v38 = vpop.permute.xlu1 %515 }
 0x6cb   :  { %851 = vmatpush.msra.mxu0 %v665_v23  ;;  %875 = vmatpush.msrb.mxu1 %v642_v34  ;;  %v518_v40 = vsub.f32 %v508_v39, %v516_v38 }
 0x6cc   :  { %828 = vmatpush.msra.mxu3 %v682_v42 }
 0x6cd   :  { %852 = vmatpush.msra.mxu0 %v659_v27  ;;  %876 = vmatpush.msrb.mxu1 %v636_v36  ;;  %v554_v42 = vsub.f32 %v518_v40, %v552_v37 }
 0x6ce   :  { %829 = vmatpush.msra.mxu3 %v676_v46 }
 0x6cf   :  { %853 = vmatpush.msra.mxu0 %v653_v29  ;;  %v609_v44 = vmul.f32 %v1244_v0, %v554_v42 }
 0x6d0   :  { %830 = vmatpush.msra.mxu3 %v670_v50 }
 0x6d1   :  { %854 = vmatpush.msra.mxu0 %v647_v31  ;;  %v907_v19 = vpop.permute.xlu0 %906 }
 0x6d2   :  { %831 = vmatpush.msra.mxu3 %v664_v54 }
 0x6d3   :  { %855 = vmatpush.msra.mxu0 %v641_v33 }
 0x6d4   :  { %832 = vmatpush.msra.mxu3 %v658_v63  ;;  %v726_v63 = vperm.slane %v724_v3, 0 }
 0x6d5   :  { %856 = vmatpush.msra.mxu0 %v635_v35 }
 0x6d6   :  { %833 = vmatpush.msra.mxu3 %v652_v12 }
 0x6d8   :  { %834 = vmatpush.msra.mxu3 %v646_v17 }
 0x6da   :  { %835 = vmatpush.msra.mxu3 %v640_v22  ;;  %v921_v56 = vpop.permute.xlu0 %920 }
 0x6dc   :  { %836 = vmatpush.msra.mxu3 %v634_v26 }
 0x706   :  { %v613_v43 = vpop.permute.xlu1 %612 }
 0x707   :  { %v626_v46 = vsel %vm307_vm4, %v613_v43, %v609_v44  ;;  %vm900_vm4 = vcmp.eq.s32.totalorder %v899_v55, 0 }
 0x708   :  { %v628_v49 = vsel %vm627_vm6, %v626_v46, %v617_v41 }
 0x70e   :  { %v620_v48 = vpop.permute.xlu1 %619 }
 0x70f   :  { %v624_v50 = vsel %vm623_vm7, %v620_v48, %v622_v45 }
 0x710   :  { %v630_v51 = vsel %vm629_vm8, %v628_v49, %v624_v50 }
 0x711   :  { %987 = vmatmul.msk.f32.vlgmr.msrb.gmra.mxu0 %vm738_vm9, %v630_v51  ;;  %989 = vmatmul.msk.f32.vlgmr.msra.gmra.mxu1 %vm738_vm9, %v630_v51 }
 0x712   :  { %991 = vmatmul.msk.f32.vlgmr.msrb.gmra.mxu2 %vm738_vm9, %v630_v51  ;;  %993 = vmatmul.msk.f32.vlgmr.msra.gmra.mxu3 %vm738_vm9, %v630_v51 }
 0x716   :  { %v903_v57 = vpop.permute.xlu1 %902 }
 0x717   :  { %v909_v0 = vsel %vm898_vm10, %v903_v57, %v907_v19 }
 0x718   :  { %929 = vrot.lane.b32.xlu2 %v909_v0, %s1047_s20 }
 0x719   :  { %995 = vmatmul.msk.f32.vlgmr.msra.gmra.mxu0 %vm738_vm9, %v630_v51  ;;  %997 = vmatmul.msk.f32.vlgmr.msrb.gmra.mxu1 %vm738_vm9, %v630_v51 }
 0x71f   :  { %v912_v53 = vpop.permute.xlu1 %911 }
 0x728   :  { %v916_v54 = vpop.permute.xlu1 %915 }
 0x729   :  { %v918_v61 = vsel %vm898_vm10, %v912_v53, %v916_v54 }
 0x731   :  { %v925_v60 = vpop.permute.xlu1 %924 }
 0x732   :  { %v927_v62 = vsel %vm898_vm10, %v921_v56, %v925_v60 }
 0x733   :  { %v934_v1 = vsel %vm900_vm4, %v918_v61, %v927_v62 }
 0x734   :  { %936 = vrot.lane.b32.xlu1 %v934_v1, %s1047_s20 }
 0x772   :  { %v930_v27 = vpop.permute.xlu2 %929 }
 0x78e   :  { %v778_v58 = vpop.f32.mrf.mxu0  ;;  %v798_v5 = vpop.f32.mrf.mxu1 }
 0x78f   :  { %v799_v59 = vadd.f32 %v798_v5, %v727_v4  ;;  %v779_v17 = vadd.f32 %v778_v58, %v726_v63 }
 0x791   :  { %v885_v11 = vrot.slane %v799_v59, 6 }
 0x793   :  { %v888_v21 = vsel %vm394_vm5, %v779_v17, %v885_v11 }
 0x795   :  { %v818_v9 = vpop.f32.mrf.mxu2  ;;  %v838_v10 = vpop.f32.mrf.mxu3 }
 0x796   :  { %v819_v12 = vadd.f32 %v818_v9, %v728_v6  ;;  %v839_v13 = vadd.f32 %v838_v10, %v729_v7  ;;  %v858_v14 = vpop.f32.mrf.mxu0  ;;  %v878_v25 = vpop.f32.mrf.mxu1 }
 0x797   :  { %v859_v16 = vadd.f32 %v858_v14, %v730_v8  ;;  %v879_v26 = vadd.f32 %v878_v25, %v731_v24 }
 0x798   :  { %v886_v15 = vrot.slane %v819_v12, 4  ;;  %v887_v20 = vrot.slane %v839_v13, 2 }
 0x799   :  { %895 = vst.msk [vmem:[%s1566_s4 + $0xc] sm:$0x3] %vm894_vm11, %v859_v16  ;;  %v933_v28 = vmul.f32 %v930_v27, %v879_v26  ;;  %v932_v30 = vmul.f32 %v930_v27, %v859_v16 }
 0x79a   :  { %v890_v22 = vsel %vm889_vm12, %v886_v15, %v887_v20 }
 0x79b   :  { %v891_v23 = vsel %vm742_vm3, %v888_v21, %v890_v22 }
 0x79c   :  { %893 = vst [vmem:[%s1566_s4 + $0x4] sm:$0xff] %v891_v23 }
 0x7a6   :  { %v937_v29 = vpop.permute.xlu1 %936 }
 0x7a7   :  { %v940_v31 = vadd.f32 %v937_v29, %v933_v28  ;;  %v939_v32 = vadd.f32 %v937_v29, %v932_v30 }
 0x7a9   :  { %v943_v33 = vrot.slane %v940_v31, 6 }
 0x7ab   :  { %v944_v34 = vsel %vm394_vm5, %v939_v32, %v943_v33 }
 0x7ac   :  { %945 = vrot.lane.b32.xlu0 %v944_v34, %s1048_s26 }
 0x81e   :  { %v946_v35 = vpop.permute.xlu0 %945 }
 0x81f   :  { %v947_v36 = vrot.slane %v946_v35, 2 }
 0x821   :  { %v949_v37 = vsel %vm948_vm13, %v946_v35, %v947_v36 }
 0x822   :  { %952 = vst.msk [vmem:[%s1566_s4 + $0xe] sm:$0x3] %vm951_vm14, %v949_v37 }

</bundles_post_ra>
